<compile_context>
chip_gen: v7x
topology: tpu7x:2x2x1
jax: 0.10.0
libtpu: 0.0.40
codegen_flags: <defaults>
</compile_context>

<pallas_src>
import functools

import jax
import jax.numpy as jnp
from jax.experimental import pallas as pl
from jax.experimental.pallas import tpu as pltpu


def _round_up(x, m):
    return (x + m - 1) // m * m


# ----------------------------------------------------------------------------
# Kernel 1: gated dilated temporal conv (TimeBlock), rows-tiled, im2col-fused
# ----------------------------------------------------------------------------
def _glu_conv_kernel(x_ref, wf_ref, bf_ref, o_ref, *, k, dilation):
    """x_ref: (TR, T, Cin) bf16   wf_ref: (k*Cin, 2*Cout) bf16   bf_ref: (1, 2*Cout) f32
    o_ref: (TR*T_o, Cout) bf16 with T_o = T - dilation*(k-1).
    out = (conv1 + b1) * sigmoid(conv2 + b2); taps + both gates fused => ONE matmul.
    """
    tr, t, cin = x_ref.shape
    t_o = t - dilation * (k - 1)
    cout = wf_ref.shape[1] // 2

    # im2col: concatenate the k dilated time-slices along channels -> (tr*T_o, k*Cin)
    lhs = jnp.concatenate(
        [x_ref[:, j * dilation: j * dilation + t_o, :].reshape(tr * t_o, cin)
         for j in range(k)],
        axis=-1)
    acc = jnp.dot(lhs, wf_ref[...], preferred_element_type=jnp.float32) + bf_ref[...]
    y = acc[:, :cout] * jax.nn.sigmoid(acc[:, cout:])
    # TODO(synk): output last dim (Cout) < 128 lowers to masked stores; a lane-dense
    # (tr, T_o*Cout) store would need a minor-dim reshape (relayout) -- skipped for safety.
    o_ref[...] = y.astype(o_ref.dtype)


def _pick_tile_rows(R, T, Cin, T_o, Cout, k, requested, vmem_tile_budget=24 << 20):
    """Row-tile size from a VMEM budget instead of a fixed constant."""
    # Per-row VMEM: double-buffered bf16 input/output tiles + im2col LHS (bf16)
    # + f32 matmul/GLU temporaries.
    per_row = (2 * T * Cin * 2 + 2 * T_o * Cout * 2
               + T_o * k * Cin * 2 + 3 * T_o * 2 * Cout * 4)
    cap = max(8, (vmem_tile_budget // per_row) // 8 * 8)
    tr = min(requested, cap, _round_up(R, 8))
    if R > 8:
        # Keep >= 2 evenly-sized grid steps so v7x can shard the parallel axis
        # over its 2 TensorCores (harmless on v5e/v6e).
        tr = min(tr, _round_up((R + 1) // 2, 8))
    return max(8, (tr // 8) * 8)


def glu_dilated_conv(rows, w1, b1, w2, b2, *, k, dilation, tile_rows=256):
    """rows: (R, T, Cin) f32 -> (R, T_o, Cout) bf16."""
    R, T, Cin = rows.shape
    Cout = w1.shape[2]
    T_o = T - dilation * (k - 1)

    # Fuse both GLU gates and all k taps into one (k*Cin, 2*Cout) weight.
    wf = jnp.concatenate([w1, w2], axis=2).astype(jnp.bfloat16).reshape(k * Cin, 2 * Cout)
    bf = jnp.concatenate([b1, b2], axis=1).astype(jnp.float32)    # (1, 2*Cout)
    rows_bf = rows.astype(jnp.bfloat16)

    tr = _pick_tile_rows(R, T, Cin, T_o, Cout, k, tile_rows)
    Rp = _round_up(R, tr)
    if Rp != R:
        rows_bf = jnp.pad(rows_bf, ((0, Rp - R), (0, 0), (0, 0)))
    grid = (Rp // tr,)

    out = pl.pallas_call(
        functools.partial(_glu_conv_kernel, k=k, dilation=dilation),
        out_shape=jax.ShapeDtypeStruct((Rp * T_o, Cout), jnp.bfloat16),
        grid=grid,
        in_specs=[
            pl.BlockSpec((tr, T, Cin), lambda i: (i, 0, 0)),
            pl.BlockSpec((k * Cin, 2 * Cout), lambda i: (0, 0)),
            pl.BlockSpec((1, 2 * Cout), lambda i: (0, 0)),
        ],
        out_specs=pl.BlockSpec((tr * T_o, Cout), lambda i: (i, 0)),
        compiler_params=pltpu.CompilerParams(
            dimension_semantics=("parallel",),
            # Safe on v7x (64 MiB physical VMEM); v5e/v6e (128 MiB) could go higher.
            vmem_limit_bytes=48 * 1024 * 1024),
        cost_estimate=pl.CostEstimate(
            flops=2 * Rp * T_o * (k * Cin) * (2 * Cout),
            transcendentals=Rp * T_o * Cout,
            bytes_accessed=(Rp * T * Cin * 2 + Rp * T_o * Cout * 2
                            + k * Cin * 2 * Cout * 2 + 2 * Cout * 4)),
    )(rows_bf, wf, bf)

    return out.reshape(Rp, T_o, Cout)[:R]


# ----------------------------------------------------------------------------
# Kernel 2: PCNLayer -- in-kernel trajectory gather (scalar prefetch), one
# fused matmul per (segment, trajectory) step, trajectory mean accumulated
# directly into the resident output block.
# ----------------------------------------------------------------------------
def _pcn_layer_kernel(idx_ref, *refs, traj_len, lo, k, dilation, ntraj):
    """refs = L node refs (1, B*Tc, C) bf16, wf (k*C, 2*Cout) bf16, bf (1, 2*Cout) f32,
    o_ref (1, Lo*B*Tc, Cout) f32.  Grid = (S, Ntraj); Ntraj is the mean-reduction axis,
    accumulated in place in o_ref (its block index is constant over that axis).
    """
    node_refs = refs[:traj_len]
    wf_ref, bf_ref, o_ref = refs[traj_len:]
    m = pl.program_id(1)

    @pl.when(m == 0)
    def _():
        o_ref[...] = jnp.zeros_like(o_ref)

    # Fuse all Lo output positions and k taps into ONE matmul:
    # LHS rows ordered (position p, b*Tc), columns ordered (tap j, channel c).
    taps = [jnp.concatenate([node_refs[p + j * dilation][0] for j in range(k)], axis=-1)
            for p in range(lo)]
    lhs = jnp.concatenate(taps, axis=0)                            # (Lo*BTc, k*C)
    acc = jnp.dot(lhs, wf_ref[...], preferred_element_type=jnp.float32) + bf_ref[...]
    cout = bf_ref.shape[1] // 2
    y = acc[:, :cout] * jax.nn.sigmoid(acc[:, cout:])
    o_ref[0] = o_ref[0] + y                                        # running sum over trajectories

    @pl.when(m == ntraj - 1)
    def _():
        o_ref[...] = o_ref[...] * (1.0 / ntraj)


def pcn_layer(xcat, traj_idx, w1, b1, w2, b2, *, batch, tc, k, dilation):
    """xcat: (N, B*Tc, C) node features, traj_idx: (S, Ntraj, L) node ids.
    Returns (B, S, Cout, Tc, Lo) = PCNLayer(x).permute(1,0,2,3,4) in torch terms.
    """
    N, BTc, C = xcat.shape
    S, Ntraj, L = traj_idx.shape
    Cout = w1.shape[2]
    Lo = L - dilation * (k - 1)

    wf = jnp.concatenate([w1, w2], axis=2).astype(jnp.bfloat16).reshape(k * C, 2 * Cout)
    bf = jnp.concatenate([b1, b2], axis=1).astype(jnp.float32)     # (1, 2*Cout)
    xcat_bf = xcat.astype(jnp.bfloat16)
    idx_flat = traj_idx.reshape(-1).astype(jnp.int32)

    def node_map(j):
        def _map(s, m, idx_ref):
            return (idx_ref[(s * Ntraj + m) * L + j], 0, 0)
        return _map

    # TODO(synk): for large L/Ntraj a manual double-buffered make_async_copy gather
    # (grid=(S,), xcat in pl.ANY) would cut grid-step and per-node DMA overhead and
    # bound VMEM on v7x; the BlockSpec gather below keeps L double-buffered node blocks.
    kern = functools.partial(_pcn_layer_kernel, traj_len=L, lo=Lo, k=k,
                             dilation=dilation, ntraj=Ntraj)
    out = pl.pallas_call(
        kern,
        out_shape=jax.ShapeDtypeStruct((S, Lo * BTc, Cout), jnp.float32),
        grid_spec=pltpu.PrefetchScalarGridSpec(
            num_scalar_prefetch=1,
            grid=(S, Ntraj),
            in_specs=([pl.BlockSpec((1, BTc, C), node_map(j)) for j in range(L)]
                      + [pl.BlockSpec((k * C, 2 * Cout), lambda s, m, idx: (0, 0)),
                         pl.BlockSpec((1, 2 * Cout), lambda s, m, idx: (0, 0))]),
            out_specs=pl.BlockSpec((1, Lo * BTc, Cout), lambda s, m, idx: (s, 0, 0))),
        compiler_params=pltpu.CompilerParams(
            dimension_semantics=("parallel", "arbitrary"),
            vmem_limit_bytes=32 * 1024 * 1024),
        cost_estimate=pl.CostEstimate(
            flops=2 * S * Ntraj * (Lo * BTc) * (k * C) * (2 * Cout),
            transcendentals=S * Ntraj * Lo * BTc * Cout,
            bytes_accessed=(S * Ntraj * L * BTc * C * 2 + S * Lo * BTc * Cout * 4
                            + k * C * 2 * Cout * 2 + 2 * Cout * 4)),
    )(idx_flat, *([xcat_bf] * L), wf, bf)

    out5 = out.reshape(S, Lo, batch, tc, Cout)          # rows were ordered (p, b, tc)
    return jnp.transpose(out5, (2, 0, 4, 3, 1))         # (B, S, Cout, Tc, Lo)


# ----------------------------------------------------------------------------
# PCNBlock forward
# ----------------------------------------------------------------------------
@functools.partial(jax.jit, static_argnames=("tile_rows",))
def pcn_block_forward(params, X, X_daily, X_weekly, traj_idx, *, tile_rows=256):
    B, N, T, F = X.shape

    # TimeBlock (shared weights): three calls merged into one launch; rows ordered
    # (node, batch, source) so kernel-1 output IS the PCNLayer gather layout --
    # no inter-kernel HBM transposes, only metadata reshapes.
    rows = jnp.transpose(jnp.stack([X, X_daily, X_weekly], axis=2),
                         (1, 0, 2, 3, 4)).reshape(N * B * 3, T, F)
    tb = glu_dilated_conv(rows, params["tb_w1"], params["tb_b1"],
                          params["tb_w2"], params["tb_b2"],
                          k=3, dilation=2, tile_rows=tile_rows)     # (N*B*3, T_o, C) bf16
    T_o, C = tb.shape[1], tb.shape[2]
    Tc = 3 * T_o
    # flat order (n, b, src, t, c) => Tc index = src*T_o + t, exactly
    # torch.cat((x, x_daily, x_weekly), dim=2) followed by permute(1, 0, 2, 3).
    xcat = tb.reshape(N, B * Tc, C)

    return pcn_layer(xcat, traj_idx, params["pl_w1"], params["pl_b1"],
                     params["pl_w2"], params["pl_b2"],
                     batch=B, tc=Tc, k=2, dilation=2)               # (B, S, C, Tc, Lo)


def pcn_block_apply(params, X, X_daily, X_weekly, X_coarse,
                    r2sDic, s2rDic, trajDic, *, tile_rows=256):
    # X_coarse and r2sDic are accepted (as in PCNBlock.forward) but never used by it.
    del X_coarse, r2sDic
    # TODO(synk): assumes every segment has the same #trajectories and trajectory
    # length so the gather can be a dense scalar-prefetch index table.
    traj_idx = jnp.array([trajDic[s] for s in s2rDic], dtype=jnp.int32)  # (S, Ntraj, L)
    return pcn_block_forward(params, X, X_daily, X_weekly, traj_idx, tile_rows=tile_rows)


# ----------------------------------------------------------------------------
# Pure-JAX reference (PCNBlock semantics, bf16 casts matched to the kernels)
# ----------------------------------------------------------------------------
def _q(a):
    return a.astype(jnp.bfloat16).astype(jnp.float32)


def _glu_conv_ref(rows, w1, b1, w2, b2, *, k, dilation):
    T = rows.shape[1]
    T_o = T - dilation * (k - 1)
    a1 = sum(jnp.einsum("rtc,cd->rtd", rows[:, j * dilation:j * dilation + T_o, :], w1[j])
             for j in range(k)) + b1[0]
    a2 = sum(jnp.einsum("rtc,cd->rtd", rows[:, j * dilation:j * dilation + T_o, :], w2[j])
             for j in range(k)) + b2[0]
    return a1 * jax.nn.sigmoid(a2)


def pcn_block_ref(params, X, X_daily, X_weekly, traj_idx):
    B, N, T, F = X.shape
    w1, w2 = _q(params["tb_w1"]), _q(params["tb_w2"])

    def tb(A):
        rows = _q(A).reshape(B * N, T, F)
        out = _glu_conv_ref(rows, w1, params["tb_b1"], w2, params["tb_b2"], k=3, dilation=2)
        return out.reshape(B, N, T - 4, -1)

    x = jnp.concatenate([tb(X), tb(X_daily), tb(X_weekly)], axis=2)   # (B, N, Tc, C)
    x = _q(x)                                                         # kernels store bf16
    xcat = jnp.transpose(x, (1, 0, 2, 3))                             # (N, B, Tc, C)

    g = xcat[traj_idx]                                                # (S, Nt, L, B, Tc, C)
    pw1, pw2 = _q(params["pl_w1"]), _q(params["pl_w2"])
    k2, d2 = 2, 2
    Lo = traj_idx.shape[2] - d2 * (k2 - 1)
    a1 = sum(jnp.einsum("smlbtc,cd->smbtld", g[:, :, j * d2:j * d2 + Lo], pw1[j])
             for j in range(k2)) + params["pl_b1"][0]
    a2 = sum(jnp.einsum("smlbtc,cd->smbtld", g[:, :, j * d2:j * d2 + Lo], pw2[j])
             for j in range(k2)) + params["pl_b2"][0]
    h = (a1 * jax.nn.sigmoid(a2)).mean(axis=1)                        # (S, B, Tc, Lo, C)
    return jnp.transpose(h, (1, 0, 4, 2, 3))                          # (B, S, C, Tc, Lo)


# ----------------------------------------------------------------------------
# Deterministic synthetic parameters matching the module's conv shapes
# ----------------------------------------------------------------------------
def init_params(key, num_features, cout):
    ks = jax.random.split(key, 8)

    def u(k, shape, fan_in):
        bound = 1.0 / (fan_in ** 0.5)
        return jax.random.uniform(k, shape, jnp.float32, -bound, bound)

    return {
        # TimeBlock convs: Conv2d(F, cout, (1,3), dilation=2) -> taps (3, F, cout)
        "tb_w1": u(ks[0], (3, num_features, cout), num_features * 3),
        "tb_b1": u(ks[1], (1, cout), num_features * 3),
        "tb_w2": u(ks[2], (3, num_features, cout), num_features * 3),
        "tb_b2": u(ks[3], (1, cout), num_features * 3),
        # PCNLayer convs: Conv2d(cout, cout, (1,2), dilation=2) -> taps (2, cout, cout)
        "pl_w1": u(ks[4], (2, cout, cout), cout * 2),
        "pl_b1": u(ks[5], (1, cout), cout * 2),
        "pl_w2": u(ks[6], (2, cout, cout), cout * 2),
        "pl_b2": u(ks[7], (1, cout), cout * 2),
    }


if __name__ == "__main__":
    num_nodes, num_features = 6, 8
    out_channels = 16
    T_in, B = 9, 2
    S = 6                     # number of segments (keys of s2rDic)
    Ntraj, L = 2, 5           # trajectories per segment, trajectory length

    s2rDic = {s: [s] for s in range(S)}                 # values unused by PCNBlock
    r2sDic = {0: [0, 1], 1: [2, 3], 2: [4, 5]}          # unused by PCNBlock.forward
    trajDic = {s: [[(s + m + j) % num_nodes for j in range(L)] for m in range(Ntraj)]
               for s in range(S)}

    key = jax.random.PRNGKey(0)
    kx, kd, kw, kc, kp = jax.random.split(key, 5)
    shape = (B, num_nodes, T_in, num_features)
    X = jax.random.normal(kx, shape, jnp.float32)
    X_daily = jax.random.normal(kd, shape, jnp.float32)
    X_weekly = jax.random.normal(kw, shape, jnp.float32)
    X_coarse = jax.random.normal(kc, shape, jnp.float32)
    params = init_params(kp, num_features, out_channels)

    out = pcn_block_apply(params, X, X_daily, X_weekly, X_coarse,
                          r2sDic, s2rDic, trajDic)
    out = jax.block_until_ready(out)

    traj_idx = jnp.array([trajDic[s] for s in s2rDic], dtype=jnp.int32)
    ref = jax.block_until_ready(pcn_block_ref(params, X, X_daily, X_weekly, traj_idx))

    Tc, Lo = 3 * (T_in - 4), L - 2
    assert out.shape == (B, S, out_channels, Tc, Lo), out.shape
    err = float(jnp.max(jnp.abs(out - ref)))
    assert err < 2e-2, err
    print("KERNEL_OK")
</pallas_src>

<mosaic_0001>
module attributes {stable_mosaic.version = 11 : i64} {
  func.func @_glu_conv_kernel(%arg0: i32, %arg1: memref<24x9x8xbf16, #tpu.memory_space<vmem>>, %arg2: memref<24x32xbf16, #tpu.memory_space<vmem>>, %arg3: memref<1x32xf32, #tpu.memory_space<vmem>>, %arg4: memref<120x16xbf16, #tpu.memory_space<vmem>>) attributes {dimension_semantics = [#tpu.dimension_semantics<parallel>], iteration_bounds = array<i64: 2>, scalar_prefetch = 0 : i64, scratch_operands = 0 : i64, tpu.core_type = #tpu.core_type<tc>, window_params = [{transform_indices = @transform_0, window_bounds = array<i64: 24, 9, 8>}, {pipeline_mode = #tpu.pipeline_mode<synchronous>, transform_indices = @transform_1, window_bounds = array<i64: 24, 32>}, {pipeline_mode = #tpu.pipeline_mode<synchronous>, transform_indices = @transform_2, window_bounds = array<i64: 1, 32>}, {transform_indices = @transform_3, window_bounds = array<i64: 120, 16>}]} {
    %c0 = arith.constant 0 : index
    %c0_0 = arith.constant 0 : index
    %c0_1 = arith.constant 0 : index
    %0 = vector.load %arg1[%c0, %c0_0, %c0_1] : memref<24x9x8xbf16, #tpu.memory_space<vmem>>, vector<24x5x8xbf16>
    %1 = vector.shape_cast %0 : vector<24x5x8xbf16> to vector<120x8xbf16>
    %c0_2 = arith.constant 0 : index
    %c2 = arith.constant 2 : index
    %c0_3 = arith.constant 0 : index
    %2 = vector.load %arg1[%c0_2, %c2, %c0_3] : memref<24x9x8xbf16, #tpu.memory_space<vmem>>, vector<24x5x8xbf16>
    %3 = vector.shape_cast %2 : vector<24x5x8xbf16> to vector<120x8xbf16>
    %c0_4 = arith.constant 0 : index
    %c4 = arith.constant 4 : index
    %c0_5 = arith.constant 0 : index
    %4 = vector.load %arg1[%c0_4, %c4, %c0_5] : memref<24x9x8xbf16, #tpu.memory_space<vmem>>, vector<24x5x8xbf16>
    %5 = vector.shape_cast %4 : vector<24x5x8xbf16> to vector<120x8xbf16>
    %6 = tpu.concatenate %1, %3, %5 in 1 : vector<120x8xbf16>, vector<120x8xbf16>, vector<120x8xbf16> -> vector<120x24xbf16>
    %c0_6 = arith.constant 0 : index
    %c0_7 = arith.constant 0 : index
    %7 = vector.load %arg2[%c0_6, %c0_7] : memref<24x32xbf16, #tpu.memory_space<vmem>>, vector<24x32xbf16>
    %cst = arith.constant dense<0.000000e+00> : vector<120x32xf32>
    %8 = tpu.matmul %6, %7, %cst {dimension_numbers = #tpu.dot_dimension_numbers<[1], [0], [0], [1], [0, 0, 1, 1], [], []>} : vector<120x24xbf16>, vector<24x32xbf16>, vector<120x32xf32> -> vector<120x32xf32>
    %c0_8 = arith.constant 0 : index
    %c0_9 = arith.constant 0 : index
    %9 = vector.load %arg3[%c0_8, %c0_9] : memref<1x32xf32, #tpu.memory_space<vmem>>, vector<1x32xf32>
    %10 = vector.broadcast %9 : vector<1x32xf32> to vector<120x32xf32>
    %11 = arith.addf %8, %10 : vector<120x32xf32>
    %12 = vector.extract_strided_slice %11 {offsets = [0, 0], sizes = [120, 16], strides = [1, 1]} : vector<120x32xf32> to vector<120x16xf32>
    %13 = vector.extract_strided_slice %11 {offsets = [0, 16], sizes = [120, 16], strides = [1, 1]} : vector<120x32xf32> to vector<120x16xf32>
    %14 = arith.negf %13 : vector<120x16xf32>
    %15 = math.exp %14 : vector<120x16xf32>
    %cst_10 = arith.constant 1.000000e+00 : f32
    %16 = vector.broadcast %cst_10 : f32 to vector<120x16xf32>
    %17 = arith.addf %16, %15 : vector<120x16xf32>
    %18 = arith.divf %16, %17 : vector<120x16xf32>
    %19 = arith.mulf %12, %18 : vector<120x16xf32>
    %20 = arith.truncf %19 : vector<120x16xf32> to vector<120x16xbf16>
    %c0_11 = arith.constant 0 : index
    %c0_12 = arith.constant 0 : index
    %21 = vector.load %arg4[%c0_11, %c0_12] : memref<120x16xbf16, #tpu.memory_space<vmem>>, vector<120x16xbf16>
    tpu.vector_store %arg4[%c0_11, %c0_12], %20 {strides = array<i32>} : memref<120x16xbf16, #tpu.memory_space<vmem>>, vector<120x16xbf16>,
    return
  }
  func.func @transform_0(%arg0: i32) -> (i32, i32, i32) {
    %c0_i32 = arith.constant 0 : i32
    %c0_i32_0 = arith.constant 0 : i32
    %c0_i32_1 = arith.constant 0 : i32
    return %arg0, %c0_i32, %c0_i32_0 : i32, i32, i32
  }
  func.func @transform_1(%arg0: i32) -> (i32, i32) {
    %c0_i32 = arith.constant 0 : i32
    %c0_i32_0 = arith.constant 0 : i32
    %c0_i32_1 = arith.constant 0 : i32
    return %c0_i32, %c0_i32_0 : i32, i32
  }
  func.func @transform_2(%arg0: i32) -> (i32, i32) {
    %c0_i32 = arith.constant 0 : i32
    %c0_i32_0 = arith.constant 0 : i32
    %c0_i32_1 = arith.constant 0 : i32
    return %c0_i32, %c0_i32_0 : i32, i32
  }
  func.func @transform_3(%arg0: i32) -> (i32, i32) {
    %c0_i32 = arith.constant 0 : i32
    %c0_i32_0 = arith.constant 0 : i32
    return %arg0, %c0_i32 : i32, i32
  }
}

module attributes {stable_mosaic.version = 11 : i64} {
  func.func @_pcn_layer_kernel(%arg0: i32, %arg1: i32, %arg2: memref<60xi32, #tpu.memory_space<smem>>, %arg3: memref<1x30x16xbf16, #tpu.memory_space<vmem>>, %arg4: memref<1x30x16xbf16, #tpu.memory_space<vmem>>, %arg5: memref<1x30x16xbf16, #tpu.memory_space<vmem>>, %arg6: memref<1x30x16xbf16, #tpu.memory_space<vmem>>, %arg7: memref<1x30x16xbf16, #tpu.memory_space<vmem>>, %arg8: memref<32x32xbf16, #tpu.memory_space<vmem>>, %arg9: memref<1x32xf32, #tpu.memory_space<vmem>>, %arg10: memref<1x90x16xf32, #tpu.memory_space<vmem>>) attributes {dimension_semantics = [#tpu.dimension_semantics<parallel>, #tpu.dimension_semantics<arbitrary>], iteration_bounds = array<i64: 6, 2>, scalar_prefetch = 1 : i64, scratch_operands = 0 : i64, tpu.core_type = #tpu.core_type<tc>, window_params = [{transform_indices = @transform_0, window_bounds = array<i64: 1, 30, 16>}, {transform_indices = @transform_1, window_bounds = array<i64: 1, 30, 16>}, {transform_indices = @transform_2, window_bounds = array<i64: 1, 30, 16>}, {transform_indices = @transform_3, window_bounds = array<i64: 1, 30, 16>}, {transform_indices = @transform_4, window_bounds = array<i64: 1, 30, 16>}, {pipeline_mode = #tpu.pipeline_mode<synchronous>, transform_indices = @transform_5, window_bounds = array<i64: 32, 32>}, {pipeline_mode = #tpu.pipeline_mode<synchronous>, transform_indices = @transform_6, window_bounds = array<i64: 1, 32>}, {transform_indices = @transform_7, window_bounds = array<i64: 1, 90, 16>}]} {
    %c0_i32 = arith.constant 0 : i32
    %0 = arith.cmpi eq, %arg1, %c0_i32 : i32
    %1 = arith.extui %0 : i1 to i32
    %c0_i32_0 = arith.constant 0 : i32
    %2 = arith.cmpi ne, %1, %c0_i32_0 : i32
    scf.if %2 {
      %cst_30 = arith.constant 0.000000e+00 : f32
      %41 = vector.broadcast %cst_30 : f32 to vector<1x90x16xf32>
      %c0_31 = arith.constant 0 : index
      %c0_32 = arith.constant 0 : index
      %c0_33 = arith.constant 0 : index
      %42 = vector.load %arg10[%c0_31, %c0_32, %c0_33] : memref<1x90x16xf32, #tpu.memory_space<vmem>>, vector<1x90x16xf32>
      tpu.vector_store %arg10[%c0_31, %c0_32, %c0_33], %41 {strides = array<i32>} : memref<1x90x16xf32, #tpu.memory_space<vmem>>, vector<1x90x16xf32>,
    } else {
    }
    %c0 = arith.constant 0 : index
    %c0_1 = arith.constant 0 : index
    %c0_2 = arith.constant 0 : index
    %3 = vector.load %arg3[%c0, %c0_1, %c0_2] : memref<1x30x16xbf16, #tpu.memory_space<vmem>>, vector<1x30x16xbf16>
    %4 = vector.shape_cast %3 : vector<1x30x16xbf16> to vector<30x16xbf16>
    %c0_3 = arith.constant 0 : index
    %c0_4 = arith.constant 0 : index
    %c0_5 = arith.constant 0 : index
    %5 = vector.load %arg5[%c0_3, %c0_4, %c0_5] : memref<1x30x16xbf16, #tpu.memory_space<vmem>>, vector<1x30x16xbf16>
    %6 = vector.shape_cast %5 : vector<1x30x16xbf16> to vector<30x16xbf16>
    %7 = tpu.concatenate %4, %6 in 1 : vector<30x16xbf16>, vector<30x16xbf16> -> vector<30x32xbf16>
    %c0_6 = arith.constant 0 : index
    %c0_7 = arith.constant 0 : index
    %c0_8 = arith.constant 0 : index
    %8 = vector.load %arg4[%c0_6, %c0_7, %c0_8] : memref<1x30x16xbf16, #tpu.memory_space<vmem>>, vector<1x30x16xbf16>
    %9 = vector.shape_cast %8 : vector<1x30x16xbf16> to vector<30x16xbf16>
    %c0_9 = arith.constant 0 : index
    %c0_10 = arith.constant 0 : index
    %c0_11 = arith.constant 0 : index
    %10 = vector.load %arg6[%c0_9, %c0_10, %c0_11] : memref<1x30x16xbf16, #tpu.memory_space<vmem>>, vector<1x30x16xbf16>
    %11 = vector.shape_cast %10 : vector<1x30x16xbf16> to vector<30x16xbf16>
    %12 = tpu.concatenate %9, %11 in 1 : vector<30x16xbf16>, vector<30x16xbf16> -> vector<30x32xbf16>
    %c0_12 = arith.constant 0 : index
    %c0_13 = arith.constant 0 : index
    %c0_14 = arith.constant 0 : index
    %13 = vector.load %arg5[%c0_12, %c0_13, %c0_14] : memref<1x30x16xbf16, #tpu.memory_space<vmem>>, vector<1x30x16xbf16>
    %14 = vector.shape_cast %13 : vector<1x30x16xbf16> to vector<30x16xbf16>
    %c0_15 = arith.constant 0 : index
    %c0_16 = arith.constant 0 : index
    %c0_17 = arith.constant 0 : index
    %15 = vector.load %arg7[%c0_15, %c0_16, %c0_17] : memref<1x30x16xbf16, #tpu.memory_space<vmem>>, vector<1x30x16xbf16>
    %16 = vector.shape_cast %15 : vector<1x30x16xbf16> to vector<30x16xbf16>
    %17 = tpu.concatenate %14, %16 in 1 : vector<30x16xbf16>, vector<30x16xbf16> -> vector<30x32xbf16>
    %18 = tpu.concatenate %7, %12, %17 in 0 : vector<30x32xbf16>, vector<30x32xbf16>, vector<30x32xbf16> -> vector<90x32xbf16>
    %c0_18 = arith.constant 0 : index
    %c0_19 = arith.constant 0 : index
    %19 = vector.load %arg8[%c0_18, %c0_19] : memref<32x32xbf16, #tpu.memory_space<vmem>>, vector<32x32xbf16>
    %cst = arith.constant dense<0.000000e+00> : vector<90x32xf32>
    %20 = tpu.matmul %18, %19, %cst {dimension_numbers = #tpu.dot_dimension_numbers<[1], [0], [0], [1], [0, 0, 1, 1], [], []>} : vector<90x32xbf16>, vector<32x32xbf16>, vector<90x32xf32> -> vector<90x32xf32>
    %c0_20 = arith.constant 0 : index
    %c0_21 = arith.constant 0 : index
    %21 = vector.load %arg9[%c0_20, %c0_21] : memref<1x32xf32, #tpu.memory_space<vmem>>, vector<1x32xf32>
    %22 = vector.broadcast %21 : vector<1x32xf32> to vector<90x32xf32>
    %23 = arith.addf %20, %22 : vector<90x32xf32>
    %24 = vector.extract_strided_slice %23 {offsets = [0, 0], sizes = [90, 16], strides = [1, 1]} : vector<90x32xf32> to vector<90x16xf32>
    %25 = vector.extract_strided_slice %23 {offsets = [0, 16], sizes = [90, 16], strides = [1, 1]} : vector<90x32xf32> to vector<90x16xf32>
    %26 = arith.negf %25 : vector<90x16xf32>
    %27 = math.exp %26 : vector<90x16xf32>
    %cst_22 = arith.constant 1.000000e+00 : f32
    %28 = vector.broadcast %cst_22 : f32 to vector<90x16xf32>
    %29 = arith.addf %28, %27 : vector<90x16xf32>
    %30 = arith.divf %28, %29 : vector<90x16xf32>
    %31 = arith.mulf %24, %30 : vector<90x16xf32>
    %c0_23 = arith.constant 0 : index
    %c0_24 = arith.constant 0 : index
    %c0_25 = arith.constant 0 : index
    %32 = vector.load %arg10[%c0_23, %c0_24, %c0_25] : memref<1x90x16xf32, #tpu.memory_space<vmem>>, vector<1x90x16xf32>
    %33 = vector.shape_cast %32 : vector<1x90x16xf32> to vector<90x16xf32>
    %34 = arith.addf %33, %31 : vector<90x16xf32>
    %c0_26 = arith.constant 0 : index
    %c0_27 = arith.constant 0 : index
    %c0_28 = arith.constant 0 : index
    %35 = vector.load %arg10[%c0_26, %c0_27, %c0_28] : memref<1x90x16xf32, #tpu.memory_space<vmem>>, vector<1x90x16xf32>
    %36 = vector.shape_cast %35 : vector<1x90x16xf32> to vector<90x16xf32>
    %37 = vector.shape_cast %34 : vector<90x16xf32> to vector<1x90x16xf32>
    tpu.vector_store %arg10[%c0_26, %c0_27, %c0_28], %37 {strides = array<i32>} : memref<1x90x16xf32, #tpu.memory_space<vmem>>, vector<1x90x16xf32>,
    %c1_i32 = arith.constant 1 : i32
    %38 = arith.cmpi eq, %arg1, %c1_i32 : i32
    %39 = arith.extui %38 : i1 to i32
    %c0_i32_29 = arith.constant 0 : i32
    %40 = arith.cmpi ne, %39, %c0_i32_29 : i32
    scf.if %40 {
      %c0_30 = arith.constant 0 : index
      %c0_31 = arith.constant 0 : index
      %c0_32 = arith.constant 0 : index
      %41 = vector.load %arg10[%c0_30, %c0_31, %c0_32] : memref<1x90x16xf32, #tpu.memory_space<vmem>>, vector<1x90x16xf32>
      %cst_33 = arith.constant 5.000000e-01 : f32
      %42 = vector.broadcast %cst_33 : f32 to vector<1x90x16xf32>
      %43 = arith.mulf %41, %42 : vector<1x90x16xf32>
      %c0_34 = arith.constant 0 : index
      %c0_35 = arith.constant 0 : index
      %c0_36 = arith.constant 0 : index
      %44 = vector.load %arg10[%c0_34, %c0_35, %c0_36] : memref<1x90x16xf32, #tpu.memory_space<vmem>>, vector<1x90x16xf32>
      tpu.vector_store %arg10[%c0_34, %c0_35, %c0_36], %43 {strides = array<i32>} : memref<1x90x16xf32, #tpu.memory_space<vmem>>, vector<1x90x16xf32>,
    } else {
    }
    return
  }
  func.func @transform_0(%arg0: i32, %arg1: i32, %arg2: memref<60xi32, #tpu.memory_space<smem>>) -> (i32, i32, i32) {
    %c2_i32 = arith.constant 2 : i32
    %0 = arith.muli %arg0, %c2_i32 : i32
    %1 = arith.addi %0, %arg1 : i32
    %c5_i32 = arith.constant 5 : i32
    %2 = arith.muli %1, %c5_i32 : i32
    %c0_i32 = arith.constant 0 : i32
    %3 = arith.addi %2, %c0_i32 : i32
    %4 = arith.index_cast %3 : i32 to index
    %5 = memref.load %arg2[%4] : memref<60xi32, #tpu.memory_space<smem>>
    %c0_i32_0 = arith.constant 0 : i32
    %c0_i32_1 = arith.constant 0 : i32
    %c0_i32_2 = arith.constant 0 : i32
    return %5, %c0_i32_0, %c0_i32_1 : i32, i32, i32
  }
  func.func @transform_1(%arg0: i32, %arg1: i32, %arg2: memref<60xi32, #tpu.memory_space<smem>>) -> (i32, i32, i32) {
    %c2_i32 = arith.constant 2 : i32
    %0 = arith.muli %arg0, %c2_i32 : i32
    %1 = arith.addi %0, %arg1 : i32
    %c5_i32 = arith.constant 5 : i32
    %2 = arith.muli %1, %c5_i32 : i32
    %c1_i32 = arith.constant 1 : i32
    %3 = arith.addi %2, %c1_i32 : i32
    %4 = arith.index_cast %3 : i32 to index
    %5 = memref.load %arg2[%4] : memref<60xi32, #tpu.memory_space<smem>>
    %c0_i32 = arith.constant 0 : i32
    %c0_i32_0 = arith.constant 0 : i32
    %c0_i32_1 = arith.constant 0 : i32
    return %5, %c0_i32, %c0_i32_0 : i32, i32, i32
  }
  func.func @transform_2(%arg0: i32, %arg1: i32, %arg2: memref<60xi32, #tpu.memory_space<smem>>) -> (i32, i32, i32) {
    %c2_i32 = arith.constant 2 : i32
    %0 = arith.muli %arg0, %c2_i32 : i32
    %1 = arith.addi %0, %arg1 : i32
    %c5_i32 = arith.constant 5 : i32
    %2 = arith.muli %1, %c5_i32 : i32
    %c2_i32_0 = arith.constant 2 : i32
    %3 = arith.addi %2, %c2_i32_0 : i32
    %4 = arith.index_cast %3 : i32 to index
    %5 = memref.load %arg2[%4] : memref<60xi32, #tpu.memory_space<smem>>
    %c0_i32 = arith.constant 0 : i32
    %c0_i32_1 = arith.constant 0 : i32
    %c0_i32_2 = arith.constant 0 : i32
    return %5, %c0_i32, %c0_i32_1 : i32, i32, i32
  }
  func.func @transform_3(%arg0: i32, %arg1: i32, %arg2: memref<60xi32, #tpu.memory_space<smem>>) -> (i32, i32, i32) {
    %c2_i32 = arith.constant 2 : i32
    %0 = arith.muli %arg0, %c2_i32 : i32
    %1 = arith.addi %0, %arg1 : i32
    %c5_i32 = arith.constant 5 : i32
    %2 = arith.muli %1, %c5_i32 : i32
    %c3_i32 = arith.constant 3 : i32
    %3 = arith.addi %2, %c3_i32 : i32
    %4 = arith.index_cast %3 : i32 to index
    %5 = memref.load %arg2[%4] : memref<60xi32, #tpu.memory_space<smem>>
    %c0_i32 = arith.constant 0 : i32
    %c0_i32_0 = arith.constant 0 : i32
    %c0_i32_1 = arith.constant 0 : i32
    return %5, %c0_i32, %c0_i32_0 : i32, i32, i32
  }
  func.func @transform_4(%arg0: i32, %arg1: i32, %arg2: memref<60xi32, #tpu.memory_space<smem>>) -> (i32, i32, i32) {
    %c2_i32 = arith.constant 2 : i32
    %0 = arith.muli %arg0, %c2_i32 : i32
    %1 = arith.addi %0, %arg1 : i32
    %c5_i32 = arith.constant 5 : i32
    %2 = arith.muli %1, %c5_i32 : i32
    %c4_i32 = arith.constant 4 : i32
    %3 = arith.addi %2, %c4_i32 : i32
    %4 = arith.index_cast %3 : i32 to index
    %5 = memref.load %arg2[%4] : memref<60xi32, #tpu.memory_space<smem>>
    %c0_i32 = arith.constant 0 : i32
    %c0_i32_0 = arith.constant 0 : i32
    %c0_i32_1 = arith.constant 0 : i32
    return %5, %c0_i32, %c0_i32_0 : i32, i32, i32
  }
  func.func @transform_5(%arg0: i32, %arg1: i32, %arg2: memref<60xi32, #tpu.memory_space<smem>>) -> (i32, i32) {
    %c0_i32 = arith.constant 0 : i32
    %c0_i32_0 = arith.constant 0 : i32
    %c0_i32_1 = arith.constant 0 : i32
    return %c0_i32, %c0_i32_0 : i32, i32
  }
  func.func @transform_6(%arg0: i32, %arg1: i32, %arg2: memref<60xi32, #tpu.memory_space<smem>>) -> (i32, i32) {
    %c0_i32 = arith.constant 0 : i32
    %c0_i32_0 = arith.constant 0 : i32
    %c0_i32_1 = arith.constant 0 : i32
    return %c0_i32, %c0_i32_0 : i32, i32
  }
  func.func @transform_7(%arg0: i32, %arg1: i32, %arg2: memref<60xi32, #tpu.memory_space<smem>>) -> (i32, i32, i32) {
    %c0_i32 = arith.constant 0 : i32
    %c0_i32_0 = arith.constant 0 : i32
    %c0_i32_1 = arith.constant 0 : i32
    return %arg0, %c0_i32, %c0_i32_0 : i32, i32, i32
  }
}

</mosaic_0001>

<bundles_post_ra>
// kernel: pcn_block_forward.3
= control target key start
LH: loop header
LB: loop body
LE: loop exit
PB: predicated region body
PF: predicated region fallthrough
CT: control target
= control target key end

     0   :  { %s1685_s0 = inlined_call_operand.vmem [shape: s32[60], index: 0, kind: input, shape index: {}]   ;;  %s1686_s1 = inlined_call_operand.vmem [shape: bf16[6,30,16], index: 1, kind: input, shape index: {}, may-alias: {1,2,3,4,5}]   ;;  %s1687_s2 = inlined_call_operand.vmem [shape: bf16[6,30,16], index: 2, kind: input, shape index: {}, may-alias: {1,2,3,4,5}]   ;;  %s1688_s3 = inlined_call_operand.vmem [shape: bf16[6,30,16], index: 3, kind: input, shape index: {}, may-alias: {1,2,3,4,5}]   ;;  %s1689_s4 = inlined_call_operand.vmem [shape: bf16[6,30,16], index: 4, kind: input, shape index: {}, may-alias: {1,2,3,4,5}]   ;;  %s1690_s5 = inlined_call_operand.vmem [shape: bf16[6,30,16], index: 5, kind: input, shape index: {}, may-alias: {1,2,3,4,5}]   ;;  %s1691_s6 = inlined_call_operand.vmem [shape: bf16[32,32], index: 6, kind: input, shape index: {}]   ;;  %s1692_s7 = inlined_call_operand.vmem [shape: f32[1,32], index: 7, kind: input, shape index: {}]   ;;  %s1693_s8 = inlined_call_operand.vmem [shape: f32[6,90,16], index: 8, kind: output, shape index: {}]  }
   0x1   :  { %s13_s29 = sshll.u32 %s1685_s0, 4  ;;  %s14_s29 = int_to_ptr.vmem [resolvable:$true] %s13_s29 }
   0x2   :  { %s1332_s30 = scalar_lea.vmem %s14_s29, 16  ;;  %p1337_p1 = scmp.lt.s32.totalorder %s14_s29, %s14_s29 }
   0x3   :  { %p1333_p0 = scmp.ne.s32.totalorder %s14_s29, %s1332_s30  ;;  %p1338_p2 = scmp.lt.s32.totalorder %s1332_s30, %s1332_s30 }
   0x5   :  { %p1339_p3 = por %p1338_p2, %p1337_p1 }
   0x7   :  { %p1340_p4 = pnand %p1339_p3, %p1333_p0 }
   0x9   :  { %1343 = shalt.err (!%p1340_p4)  }
   0xa   :  { %s1386_s9 = smov [#allocation3]  }
   0xb   :  { %16 = dma.vmem_to_smem %s14_s29, 16, %s1386_s9, [#allocation2] }
   0xc   :  { %1364 = dma.done.wait [#allocation2], 16 }
   0xd   :  { %1365 = vsyncadd [#allocation2], 4294967280 }
   0xe   :  { %18 = sfence }
   0xf   :  { %s1438_s10 = smov 0   ;;  %s1440_s11 = smov 0  }
  0x10   :  { %s1442_s12 = smov 0   ;;  %s1444_s0 = smov 0  }
  0x11   :  { %s1446_s13 = smov 0  }
  0x12 LB: > { %s33_s14 = sadd.s32 1, %s1376_s12  ;;  %s36_s15 = sadd.s32 1, %s1380_s0  ;;  %s1384_s13 = sphi %s1446_s13, %s24_s13   ;;  %s1380_s0 = sphi %s1444_s0, %s1699_s0   ;;  %s1376_s12 = sphi %s1442_s12, %s1698_s12   ;;  %s1372_s11 = sphi %s1440_s11, %s1697_s11   ;;  %s1368_s10 = sphi %s1438_s10, %s1696_s10  }
  0x13   : > { %p34_p5 = scmp.ge.s32.totalorder %s33_s14, 2  ;;  %p1142_p6 = scmp.ge.s32.totalorder %s1384_s13, 1 }
  0x14   : > { %p392_p7 = scmp.lt.s32.totalorder %s1384_s13, 13 }
  0x15   : > { %s1701_s14 = smov (%p34_p5, %s33_s14), 0  ;;  %s1703_s15 = smov (!%p34_p5, %s36_s15), %s1380_s0 }
  0x16   : > { %p393_p8 = pnand %p1142_p6, %p392_p7  ;;  %p38_p9 = scmp.ge.s32.totalorder %s1703_s15, 6 }
  0x17   : > { %s1143_s16 = sshll.u32 (!%p393_p8), %s1372_s11, 1  ;;  %p541_p10 = scmp.lt.s32.totalorder (!%p393_p8), %s1372_s11, 5 }
  0x18   : > { %s1705_s15 = smov (%p38_p9, %s1703_s15), 0  ;;  %396 = sbr.rel (%p393_p8) target bundleno = 572 (0x23c), region = 48 }
  0x19   : > { %1694 = sst [smem:[#allocation5_spill]] %s1705_s15  ;;  %s469_s17 = sadd.s32 (!%p393_p8), %s1368_s10, %s1143_s16 }
  0x1a   : > { %s470_s18 = smul.u32 (!%p393_p8), 5, %s469_s17  ;;  %p1159_p2 = scmp.ne.s32.totalorder (!%p393_p8), %s1368_s10, 0 }
  0x1c   : > { %s471_s19 = sld [smem:[#allocation3 + %s470_s18]] (!%p393_p8)  ;;  %s484_s20 = sadd.s32 (!%p393_p8), 1, %s470_s18 }
  0x1d   : > { %s485_s21 = sld [smem:[#allocation3 + %s484_s20]] (!%p393_p8)  ;;  %s499_s22 = sadd.s32 (!%p393_p8), 2, %s470_s18 }
  0x1e   : > { %s500_s23 = sld [smem:[#allocation3 + %s499_s22]] (!%p393_p8)  ;;  %s514_s24 = sadd.s32 (!%p393_p8), 3, %s470_s18 }
  0x1f   : > { %s1707_s11 = smov (!%p541_p10, %s1372_s11), 5  ;;  %s515_s25 = sld [smem:[#allocation3 + %s514_s24]]  ;;  %vm551_vm0 = vcmask (!%p1159_p2), 130048   ;;  %vm563_vm1 = vcmask (!%p1159_p2), 123904   ;;  %v1387_v0 = vmov (!%p1159_p2), 0.0  }
  0x20   : > { %s529_s26 = sadd.s32 4, %s470_s18  ;;  %s1227_s27 = smul.u32 96, %s1707_s11 }
  0x21   : > { %s530_s9 = sld [smem:[#allocation3 + %s529_s26]] }
  0x22   : > { %p472_p11 = scmp.lt.s32.totalorder %s471_s19, 5  ;;  %s1474_s30 = scalar_lea.vmem %s1693_s8, %s1227_s27 }
  0x23   : > { %p486_p12 = scmp.lt.s32.totalorder %s485_s21, 5  ;;  %552 = vst.msk [vmem:[%s1474_s30] sm:$0xff] (!%p1159_p2), %vm551_vm0, %v1387_v0  ;;  %553 = vst.msk [vmem:[%s1474_s30 + $0x8] sm:$0xff] (!%p1159_p2), %vm551_vm0, %v1387_v0 }
  0x24   : > { %s1709_s19 = smov (!%p472_p11, %s471_s19), 5  ;;  %p501_p13 = scmp.lt.s32.totalorder %s500_s23, 5  ;;  %554 = vst.msk [vmem:[%s1474_s30 + $0x10] sm:$0xff] (!%p1159_p2), %vm551_vm0, %v1387_v0  ;;  %555 = vst.msk [vmem:[%s1474_s30 + $0x18] sm:$0xff] (!%p1159_p2), %vm551_vm0, %v1387_v0 }
  0x25   : > { %s1711_s21 = smov (!%p486_p12, %s485_s21), 5  ;;  %s1194_s16 = sshll.u32 %s1709_s19, 4  ;;  %556 = vst.msk [vmem:[%s1474_s30 + $0x20] sm:$0xff] (!%p1159_p2), %vm551_vm0, %v1387_v0  ;;  %557 = vst.msk [vmem:[%s1474_s30 + $0x28] sm:$0xff] (!%p1159_p2), %vm551_vm0, %v1387_v0 }
  0x26   : > { %s1479_s22 = scalar_lea.vmem %s1686_s1, %s1194_s16  ;;  %s1195_s24 = sshll.u32 %s1711_s21, 4  ;;  %558 = vst.msk [vmem:[%s1474_s30 + $0x30] sm:$0xff] (!%p1159_p2), %vm551_vm0, %v1387_v0  ;;  %559 = vst.msk [vmem:[%s1474_s30 + $0x38] sm:$0xff] (!%p1159_p2), %vm551_vm0, %v1387_v0 }
  0x27   : > { %s1484_s15 = scalar_lea.vmem %s1687_s2, %s1195_s24  ;;  %p516_p0 = scmp.lt.s32.totalorder %s515_s25, 5  ;;  %560 = vst.msk [vmem:[%s1474_s30 + $0x40] sm:$0xff] (!%p1159_p2), %vm551_vm0, %v1387_v0  ;;  %561 = vst.msk [vmem:[%s1474_s30 + $0x48] sm:$0xff] (!%p1159_p2), %vm551_vm0, %v1387_v0 }
  0x28   : > { %s1713_s23 = smov (!%p501_p13, %s500_s23), 5  ;;  %p531_p1 = scmp.lt.s32.totalorder %s530_s9, 5  ;;  %562 = vst.msk [vmem:[%s1474_s30 + $0x50] sm:$0xff] (!%p1159_p2), %vm551_vm0, %v1387_v0 }
  0x29   : > { %s1715_s25 = smov (!%p516_p0, %s515_s25), 5  ;;  %s1196_s27 = sshll.u32 %s1713_s23, 4  ;;  %564 = vst.msk [vmem:[%s1474_s30 + $0x58] sm:$0x3] (!%p1159_p2), %vm563_vm1, %v1387_v0 }
  0x2a   : > { %s1489_s19 = scalar_lea.vmem %s1688_s3, %s1196_s27  ;;  %s1197_s29 = sshll.u32 %s1715_s25, 4 }
  0x2b   : > { %s520_s21 = scalar_lea.vmem %s1689_s4, %s1197_s29  ;;  %s1717_s9 = smov (!%p531_p1, %s530_s9), 5 }
  0x2c   : > { %s1198_s20 = sshll.u32 %s1717_s9, 4  ;;  %550 = sbr.rel (%p1159_p2) target bundleno = 51 (0x33), region = 52 }
  0x2d   : > { %s535_s11 = scalar_lea.vmem %s1690_s5, %s1198_s20 }
  0x33 PF: > { %v1272_v1 = vld [vmem:[%s535_s11] sm:$0xff]   ;;  %s1388_s23 = smov 16   ;;  %v1274_v3 = vld [vmem:[%s535_s11 + $0x8] sm:$0x7f]   ;;  %vm597_vm2 = vcmask 130048   ;;  %vm668_vm3 = vcmask 1046528  }
  0x34   : > { %v1273_v2 = vld [vmem:[%s520_s21] sm:$0xff]   ;;  %656 = vrot.lane.b32.xlu1 %v1272_v1, %s1388_s23  ;;  %v1275_v4 = vld [vmem:[%s520_s21 + $0x8] sm:$0x7f]   ;;  %vm708_vm4 = vcmask 261120   ;;  %vm674_vm5 = vcmask 1045504   ;;  %s1389_s28 = smov 112  }
  0x35   : > { %632 = vrot.lane.b32.xlu0 %v1273_v2, %s1388_s23  ;;  %v1276_v5 = vld [vmem:[%s1489_s19 + $0x8] sm:$0x7f]   ;;  %v1277_v6 = vld [vmem:[%s1489_s19] sm:$0xff]   ;;  %vm972_vm6 = vcmask 123904   ;;  %p1191_p3 = scmp.ne.s32.totalorder %s1368_s10, 1 }
  0x36   : > { %v1279_v7 = vld [vmem:[%s1691_s6] sm:$0xff]   ;;  %v1281_v8 = vld [vmem:[%s1691_s6 + $0x8] sm:$0xff]  }
  0x37   : > { %1223 = vmatprep.subr.bf16.mxu1 %v1279_v7  ;;  %1207 = vmatprep.subr.bf16.mxu0 %v1279_v7  ;;  %v1278_v10 = vld [vmem:[%s1484_s15] sm:$0xff]   ;;  %v1280_v12 = vld [vmem:[%s1484_s15 + $0x8] sm:$0x7f]  }
  0x38   : > { %658 = vrot.lane.b32.xlu1 %v1274_v3, %s1388_s23  ;;  %1225 = vmatpush3.bf16.msra.mxu1 %v1279_v7  ;;  %v1282_v18 = vld [vmem:[%s1479_s22 + $0x8] sm:$0x7f]   ;;  %v1283_v20 = vld [vmem:[%s1479_s22] sm:$0xff]  }
  0x39   : > { %634 = vrot.lane.b32.xlu0 %v1275_v4, %s1388_s23  ;;  %1208 = vmatpush3.bf16.msra.mxu0 %v1279_v7  ;;  %v1170_v33 = vld [vmem:[%s1692_s7] ss:$0 sm:$0xff] }
  0x3a   : > { %1224 = vmatprep.subr.bf16.mxu1 %v1281_v8  ;;  %1209 = vmatprep.subr.bf16.mxu0 %v1281_v8 }
  0x3c   : > { %595 = vrot.lane.b32.xlu1 %v1276_v5, %s1388_s23  ;;  %1226 = vmatpush3.bf16.msra.mxu1 %v1281_v8 }
  0x3d   : > { %593 = vrot.lane.b32.xlu0 %v1277_v6, %s1388_s23  ;;  %1210 = vmatpush3.bf16.msra.mxu0 %v1281_v8 }
  0xa6   : > { %v657_v9 = vpop.permute.xlu1 %656 }
  0xa7   : > { %v633_v11 = vpop.permute.xlu0 %632  ;;  %v662_v13 = vsel %vm597_vm2, %v1277_v6, %v657_v9 }
  0xa8   : > { %v638_v14 = vsel %vm597_vm2, %v1278_v10, %v633_v11  ;;  %v675_v21 = vrot.slane %v662_v13, 2 }
  0xa9   : > { %v669_v22 = vrot.slane %v638_v14, 1 }
  0xaa   : > { %v659_v15 = vpop.permute.xlu1 %658 }
  0xab   : > { %v665_v16 = vsel %vm597_vm2, %v1276_v5, %v659_v15  ;;  %v635_v17 = vpop.permute.xlu0 %634 }
  0xac   : > { %v641_v19 = vsel %vm597_vm2, %v1280_v12, %v635_v17  ;;  %v676_v23 = vrot.slane %v665_v16, 2 }
  0xad   : > { %v670_v24 = vrot.slane %v641_v19, 1 }
  0xae   : > { %v596_v25 = vpop.permute.xlu1 %595  ;;  %v677_v32 = vsel %vm674_vm5, %v675_v21, %v676_v23 }
  0xaf   : > { %v603_v26 = vsel %vm597_vm2, %v1282_v18, %v596_v25  ;;  %v594_v27 = vpop.permute.xlu0 %593  ;;  %v671_v28 = vsel %vm668_vm3, %v669_v22, %v670_v24  ;;  %v684_v29 = vsel %vm674_vm5, %v670_v24, %v675_v21 }
  0xb0   : > { %1215 = vmatprep.mubr.msk.bf16.mxu1 %vm708_vm4, %v671_v28  ;;  %v600_v30 = vsel %vm597_vm2, %v1283_v20, %v594_v27  ;;  %v680_v31 = vsel %vm668_vm3, %v603_v26, %v669_v22 }
  0xb1   : > { %1211 = vmatprep.mubr.msk.bf16.mxu0 %vm708_vm4, %v600_v30  ;;  %1216 = vmatmul.mubr.msk.bf16.vlgmr.msra.gmra.mrb[0].mxu1 %vm708_vm4, %v684_v29 }
  0xb2   : > { %1212 = vmatmul.mubr.msk.bf16.vlgmr.msra.gmra.mrb[0].mxu0 %vm708_vm4, %v680_v31  ;;  %1219 = vmatprep.mubr.msk.bf16.mxu1 %vm708_vm4, %v677_v32 }
  0xb9   : > { %1220 = vmatmul.mubr.msk.bf16.gmra.mrb[4].mxu1 %vm708_vm4, %v676_v23 }
 0x184   : > { %v1217_v34 = vpop.f32.mrb[0].mxu1 }
 0x185   : > { %v1537_v35 = vadd.f32 %v1217_v34, %v1170_v33  ;;  %v1213_v36 = vpop.f32.mrb[0].mxu0  ;;  %v774_v37 = vpop.f32.mrb[1].mxu1 }
 0x186   : > { %v1539_v38 = vadd.f32 %v1213_v36, %v1170_v33  ;;  %v758_v39 = vpop.f32.mrb[1].mxu0  ;;  %v1218_v40 = vpop.f32.mrb[2].mxu1  ;;  %v1547_v48 = vadd.f32 %v1170_v33, %v774_v37 }
 0x187   : > { %v1541_v41 = vadd.f32 %v1170_v33, %v758_v39  ;;  %v1214_v42 = vpop.f32.mrb[2].mxu0  ;;  %v777_v43 = vpop.f32.mrb[3].mxu1  ;;  %v1185_v47 = vmul.f32 -1.442695, %v1537_v35  ;;  %v1552_v51 = vadd.f32 %v1218_v40, %v1170_v33 }
 0x188   : > { %v1181_v44 = vmul.f32 -1.442695, %v1539_v38  ;;  %v1544_v45 = vadd.f32 %v1214_v42, %v1170_v33  ;;  %v761_v46 = vpop.f32.mrb[3].mxu0  ;;  %v1183_v55 = vmul.f32 -1.442695, %v1547_v48  ;;  %v1557_v56 = vadd.f32 %v1170_v33, %v777_v43 }
 0x189   : > { %v1179_v49 = vmul.f32 -1.442695, %v1541_v41  ;;  %v1550_v50 = vadd.f32 %v1170_v33, %v761_v46  ;;  %v1186_v58 = vmul.f32 -1.442695, %v1552_v51  ;;  %v939_v46 = vld [vmem:[%s1474_s30 + $0x10] sm:$0xff] }
 0x18a   : > { %1284 = vpow2.f32 %v1181_v44  ;;  %v1182_v52 = vmul.f32 -1.442695, %v1544_v45  ;;  %v1184_v63 = vmul.f32 -1.442695, %v1557_v56 }
 0x18b   : > { %1286 = vpow2.f32 %v1179_v49  ;;  %v1180_v53 = vmul.f32 -1.442695, %v1550_v50 }
 0x18c   : > { %v1221_v54 = vpop.f32.mrb[4].mxu1  ;;  %1288 = vpow2.f32 %v1185_v47 }
 0x18d   : > { %v790_v57 = vpop.f32.mrb[5].mxu1  ;;  %1290 = vpow2.f32 %v1182_v52  ;;  %v1562_v62 = vadd.f32 %v1221_v54, %v1170_v33 }
 0x18e   : > { %v1560_v59 = vadd.f32 %v1170_v33, %v790_v57  ;;  %v1222_v60 = vpop.f32.mrb[6].mxu1  ;;  %1292 = vpow2.f32 %v1180_v53  ;;  %v940_v53 = vld [vmem:[%s1474_s30 + $0x18] sm:$0xff] }
 0x18f   : > { %v793_v61 = vpop.f32.mrb[7].mxu1  ;;  %1294 = vpow2.f32 %v1183_v55  ;;  %v1189_v3 = vmul.f32 -1.442695, %v1562_v62  ;;  %v1569_v5 = vadd.f32 %v1222_v60, %v1170_v33  ;;  %v937_v55 = vld [vmem:[%s1474_s30] sm:$0xff] }
 0x190   : > { %v1565_v0 = vadd.f32 %v1170_v33, %v793_v61  ;;  %1296 = vpow2.f32 %v1186_v58  ;;  %v1187_v1 = vmul.f32 -1.442695, %v1560_v59 }
 0x191   : > { %1298 = vpow2.f32 %v1184_v63  ;;  %v1190_v12 = vmul.f32 -1.442695, %v1569_v5 }
 0x192   : > { %v1188_v6 = vmul.f32 -1.442695, %v1565_v0  ;;  %1300 = vpow2.f32 %v1187_v1  ;;  %v938_v1 = vld [vmem:[%s1474_s30 + $0x8] sm:$0xff] }
 0x194   : > { %v1285_v2 = vpop.eup %1284 }
 0x195   : > { %v843_v4 = vadd.f32 1.0, %v1285_v2  ;;  %v1287_v7 = vpop.eup %1286  ;;  %v943_v2 = vld [vmem:[%s1474_s30 + $0x30] sm:$0xff] }
 0x196   : > { %v1289_v8 = vpop.eup %1288  ;;  %v841_v9 = vadd.f32 1.0, %v1287_v7  ;;  %v944_v7 = vld [vmem:[%s1474_s30 + $0x38] sm:$0xff] }
 0x197   : > { %1302 = vrcp.f32 %v843_v4  ;;  %v1291_v10 = vpop.eup %1290  ;;  %v847_v14 = vadd.f32 1.0, %v1289_v8 }
 0x198   : > { %1304 = vpow2.f32 %v1189_v3  ;;  %v844_v11 = vadd.f32 1.0, %v1291_v10  ;;  %v1293_v13 = vpop.eup %1292 }
 0x199   : > { %1306 = vpow2.f32 %v1188_v6  ;;  %v1295_v15 = vpop.eup %1294  ;;  %v842_v16 = vadd.f32 1.0, %v1293_v13  ;;  %v942_v13 = vld [vmem:[%s1474_s30 + $0x28] sm:$0xff] }
 0x19a   : > { %1308 = vrcp.f32 %v841_v9  ;;  %v1297_v17 = vpop.eup %1296  ;;  %v845_v18 = vadd.f32 1.0, %v1295_v15  ;;  %v941_v9 = vld [vmem:[%s1474_s30 + $0x20] sm:$0xff] }
 0x19b   : > { %1310 = vrcp.f32 %v844_v11  ;;  %v1299_v19 = vpop.eup %1298  ;;  %v848_v20 = vadd.f32 1.0, %v1297_v17  ;;  %v945_v15 = vld [vmem:[%s1474_s30 + $0x40] sm:$0xff] }
 0x19c   : > { %1312 = vpow2.f32 %v1190_v12  ;;  %v1301_v21 = vpop.eup %1300  ;;  %v846_v24 = vadd.f32 1.0, %v1299_v19  ;;  %v946_v19 = vld [vmem:[%s1474_s30 + $0x48] sm:$0xff] }
 0x19d   : > { %1314 = vrcp.f32 %v847_v14  ;;  %v849_v26 = vadd.f32 1.0, %v1301_v21  ;;  %v947_v21 = vld [vmem:[%s1474_s30 + $0x50] sm:$0xff] }
 0x19e   : > { %1316 = vrcp.f32 %v842_v16 }
 0x19f   : > { %1318 = vrcp.f32 %v845_v18 }
 0x1a0   : > { %1320 = vrcp.f32 %v848_v20 }
 0x1a1   : > { %v1303_v22 = vpop.eup %1302  ;;  %1322 = vrcp.f32 %v846_v24 }
 0x1a2   : > { %v1305_v23 = vpop.eup %1304  ;;  %893 = vrot.lane.b32.xlu0 %v1303_v22, %s1389_s28  ;;  %1324 = vrcp.f32 %v849_v26  ;;  %v948_v26 = vld [vmem:[%s1474_s30 + $0x58] sm:$0x3] }
 0x1a3   : > { %v1307_v25 = vpop.eup %1306  ;;  %v851_v29 = vadd.f32 1.0, %v1305_v23 }
 0x1a4   : > { %v1309_v27 = vpop.eup %1308  ;;  %v850_v31 = vadd.f32 1.0, %v1307_v25 }
 0x1a5   : > { %v1311_v28 = vpop.eup %1310  ;;  %1326 = vrcp.f32 %v851_v29 }
 0x1a6   : > { %895 = vrot.lane.b32.xlu1 %v1311_v28, %s1389_s28  ;;  %889 = vrot.lane.b32.xlu0 %v1309_v27, %s1389_s28  ;;  %v1313_v30 = vpop.eup %1312  ;;  %1328 = vrcp.f32 %v850_v31 }
 0x1a7   : > { %v1315_v32 = vpop.eup %1314  ;;  %v852_v34 = vadd.f32 1.0, %v1313_v30 }
 0x1a8   : > { %v1317_v33 = vpop.eup %1316 }
 0x1a9   : > { %v1319_v36 = vpop.eup %1318  ;;  %1330 = vrcp.f32 %v852_v34 }
 0x1aa   : > { %891 = vrot.lane.b32.xlu1 %v1317_v33, %s1389_s28  ;;  %901 = vrot.lane.b32.xlu0 %v1315_v32, %s1389_s28  ;;  %v1321_v37 = vpop.eup %1320 }
 0x1ab   : > { %v1323_v39 = vpop.eup %1322 }
 0x1ac   : > { %v1325_v40 = vpop.eup %1324 }
 0x1ae   : > { %903 = vrot.lane.b32.xlu1 %v1321_v37, %s1389_s28  ;;  %897 = vrot.lane.b32.xlu0 %v1319_v36, %s1389_s28 }
 0x1af   : > { %v1327_v42 = vpop.eup %1326 }
 0x1b0   : > { %v1329_v43 = vpop.eup %1328 }
 0x1b2   : > { %899 = vrot.lane.b32.xlu1 %v1323_v39, %s1389_s28  ;;  %905 = vrot.lane.b32.xlu0 %v1325_v40, %s1389_s28 }
 0x1b3   : > { %v1331_v44 = vpop.eup %1330 }
 0x1b6   : > { %907 = vrot.lane.b32.xlu1 %v1329_v43, %s1389_s28  ;;  %909 = vrot.lane.b32.xlu0 %v1327_v42, %s1389_s28 }
 0x1ba   : > { %911 = vrot.lane.b32.xlu1 %v1331_v44, %s1389_s28 }
 0x214   : > { %v894_v47 = vpop.permute.xlu0 %893 }
 0x215   : > { %v927_v49 = vmul.f32 %v894_v47, %v1539_v38 }
 0x217   : > { %v951_v52 = vadd.f32 %v939_v46, %v927_v49 }
 0x218   : > { %v896_v54 = vpop.permute.xlu1 %895  ;;  %v890_v57 = vpop.permute.xlu0 %889 }
 0x219   : > { %963 = vst.msk [vmem:[%s1474_s30 + $0x10] sm:$0xff] %vm597_vm2, %v951_v52  ;;  %v928_v58 = vmul.f32 %v896_v54, %v1544_v45  ;;  %v925_v60 = vmul.f32 %v890_v57, %v1541_v41 }
 0x21b   : > { %v952_v61 = vadd.f32 %v940_v53, %v928_v58  ;;  %v949_v63 = vadd.f32 %v937_v55, %v925_v60 }
 0x21c   : > { %v892_v38 = vpop.permute.xlu1 %891  ;;  %v902_v3 = vpop.permute.xlu0 %901 }
 0x21d   : > { %964 = vst.msk [vmem:[%s1474_s30 + $0x18] sm:$0xff] %vm597_vm2, %v952_v61  ;;  %961 = vst.msk [vmem:[%s1474_s30] sm:$0xff] %vm597_vm2, %v949_v63  ;;  %v926_v4 = vmul.f32 %v892_v38, %v1550_v50  ;;  %v931_v45 = vmul.f32 %v902_v3, %v1537_v35 }
 0x21f   : > { %v950_v6 = vadd.f32 %v938_v1, %v926_v4  ;;  %v955_v41 = vadd.f32 %v943_v2, %v931_v45 }
 0x220   : > { %v904_v8 = vpop.permute.xlu1 %903  ;;  %v898_v10 = vpop.permute.xlu0 %897 }
 0x221   : > { %962 = vst.msk [vmem:[%s1474_s30 + $0x8] sm:$0xff] %vm597_vm2, %v950_v6  ;;  %967 = vst.msk [vmem:[%s1474_s30 + $0x30] sm:$0xff] %vm597_vm2, %v955_v41  ;;  %v932_v11 = vmul.f32 %v904_v8, %v1552_v51  ;;  %v929_v50 = vmul.f32 %v898_v10, %v1547_v48 }
 0x223   : > { %v956_v12 = vadd.f32 %v944_v7, %v932_v11  ;;  %v953_v35 = vadd.f32 %v941_v9, %v929_v50 }
 0x224   : > { %v900_v14 = vpop.permute.xlu1 %899  ;;  %v906_v16 = vpop.permute.xlu0 %905  ;;  %v981_v32 = vld [vmem:[%s1474_s30 + $0x18] sm:$0xff] (!%p1191_p3) }
 0x225   : > { %968 = vst.msk [vmem:[%s1474_s30 + $0x38] sm:$0xff] %vm597_vm2, %v956_v12  ;;  %965 = vst.msk [vmem:[%s1474_s30 + $0x20] sm:$0xff] %vm597_vm2, %v953_v35  ;;  %v930_v17 = vmul.f32 %v900_v14, %v1557_v56  ;;  %v933_v51 = vmul.f32 %v906_v16, %v1560_v59  ;;  %v993_v36 = vmul.f32 (!%p1191_p3), 0.5, %v981_v32 }
 0x227   : > { %v954_v48 = vadd.f32 %v942_v13, %v930_v17  ;;  %v957_v18 = vadd.f32 %v945_v15, %v933_v51  ;;  %1005 = vst.msk [vmem:[%s1474_s30 + $0x18] sm:$0xff] (!%p1191_p3), %vm597_vm2, %v993_v36 }
 0x228   : > { %v908_v20 = vpop.permute.xlu1 %907  ;;  %v910_v22 = vpop.permute.xlu0 %909  ;;  %v984_v40 = vld [vmem:[%s1474_s30 + $0x30] sm:$0xff] (!%p1191_p3) }
 0x229   : > { %966 = vst.msk [vmem:[%s1474_s30 + $0x28] sm:$0xff] %vm597_vm2, %v954_v48  ;;  %969 = vst.msk [vmem:[%s1474_s30 + $0x40] sm:$0xff] %vm597_vm2, %v957_v18  ;;  %v934_v23 = vmul.f32 %v908_v20, %v1565_v0  ;;  %v935_v24 = vmul.f32 %v910_v22, %v1562_v62  ;;  %v978_v62 = vld [vmem:[%s1474_s30] sm:$0xff] (!%p1191_p3)  ;;  %v979_v0 = vld [vmem:[%s1474_s30 + $0x8] sm:$0xff] (!%p1191_p3)  ;;  %v996_v44 = vmul.f32 (!%p1191_p3), 0.5, %v984_v40 }
 0x22a   : > { %v990_v29 = vmul.f32 (!%p1191_p3), 0.5, %v978_v62  ;;  %v991_v30 = vmul.f32 (!%p1191_p3), 0.5, %v979_v0 }
 0x22b   : > { %v958_v56 = vadd.f32 %v946_v19, %v934_v23  ;;  %v959_v25 = vadd.f32 %v947_v21, %v935_v24  ;;  %977 = sbr.rel (%p1191_p3) target bundleno = 572 (0x23c), region = 56  ;;  %1008 = vst.msk [vmem:[%s1474_s30 + $0x30] sm:$0xff] (!%p1191_p3), %vm597_vm2, %v996_v44 }
 0x22c   : > { %v912_v59 = vpop.permute.xlu1 %911  ;;  %v982_v33 = vld [vmem:[%s1474_s30 + $0x20] sm:$0xff] (!%p1191_p3)  ;;  %v985_v42 = vld [vmem:[%s1474_s30 + $0x38] sm:$0xff] (!%p1191_p3)  ;;  %1002 = vst.msk [vmem:[%s1474_s30] sm:$0xff] (!%p1191_p3), %vm597_vm2, %v990_v29  ;;  %1003 = vst.msk [vmem:[%s1474_s30 + $0x8] sm:$0xff] (!%p1191_p3), %vm597_vm2, %v991_v30 }
 0x22d   : > { %970 = vst.msk [vmem:[%s1474_s30 + $0x48] sm:$0xff] %vm597_vm2, %v958_v56  ;;  %971 = vst.msk [vmem:[%s1474_s30 + $0x50] sm:$0xff] %vm597_vm2, %v959_v25  ;;  %v936_v27 = vmul.f32 %v912_v59, %v1569_v5  ;;  %v980_v5 = vld [vmem:[%s1474_s30 + $0x10] sm:$0xff] (!%p1191_p3)  ;;  %v994_v37 = vmul.f32 (!%p1191_p3), 0.5, %v982_v33  ;;  %v997_v46 = vmul.f32 (!%p1191_p3), 0.5, %v985_v42 }
 0x22e   : > { %v992_v31 = vmul.f32 (!%p1191_p3), 0.5, %v980_v5 }
 0x22f   : > { %v960_v28 = vadd.f32 %v948_v26, %v936_v27  ;;  %1006 = vst.msk [vmem:[%s1474_s30 + $0x20] sm:$0xff] (!%p1191_p3), %vm597_vm2, %v994_v37  ;;  %1009 = vst.msk [vmem:[%s1474_s30 + $0x38] sm:$0xff] (!%p1191_p3), %vm597_vm2, %v997_v46 }
 0x230   : > { %v983_v34 = vld [vmem:[%s1474_s30 + $0x28] sm:$0xff] (!%p1191_p3)  ;;  %v986_v43 = vld [vmem:[%s1474_s30 + $0x40] sm:$0xff] (!%p1191_p3)  ;;  %1004 = vst.msk [vmem:[%s1474_s30 + $0x10] sm:$0xff] (!%p1191_p3), %vm597_vm2, %v992_v31 }
 0x231   : > { %973 = vst.msk [vmem:[%s1474_s30 + $0x58] sm:$0x3] %vm972_vm6, %v960_v28  ;;  %v995_v39 = vmul.f32 (!%p1191_p3), 0.5, %v983_v34  ;;  %v998_v47 = vmul.f32 (!%p1191_p3), 0.5, %v986_v43 }
 0x233   : > { %1007 = vst.msk [vmem:[%s1474_s30 + $0x28] sm:$0xff] %vm597_vm2, %v995_v39  ;;  %1010 = vst.msk [vmem:[%s1474_s30 + $0x40] sm:$0xff] %vm597_vm2, %v998_v47 }
 0x234   : > { %v987_v49 = vld [vmem:[%s1474_s30 + $0x48] sm:$0xff]  ;;  %v988_v52 = vld [vmem:[%s1474_s30 + $0x50] sm:$0xff] }
 0x235   : > { %v999_v53 = vmul.f32 0.5, %v987_v49  ;;  %v1000_v54 = vmul.f32 0.5, %v988_v52 }
 0x237   : > { %1011 = vst.msk [vmem:[%s1474_s30 + $0x48] sm:$0xff] %vm597_vm2, %v999_v53  ;;  %1012 = vst.msk [vmem:[%s1474_s30 + $0x50] sm:$0xff] %vm597_vm2, %v1000_v54 }
 0x238   : > { %v989_v55 = vld [vmem:[%s1474_s30 + $0x58] sm:$0x3] }
 0x239   : > { %v1001_v57 = vmul.f32 0.5, %v989_v55 }
 0x23b   : > { %1013 = vst.msk [vmem:[%s1474_s30 + $0x58] sm:$0x3] %vm972_vm6, %v1001_v57 }
 0x23c PF: > { %s24_s13 = sadd.s32 1, %s1384_s13   ;;  %s1695_s19 = sld [smem:[#allocation5_spill]] }
 0x23d   : > { %p21_p4 = scmp.ge.s32.totalorder %s24_s13, 14   ;;  %s1696_s10 = smov %s1376_s12 }
 0x23e   : > { %s1697_s11 = smov %s1380_s0  ;;  %s1698_s12 = smov %s1701_s14 }
 0x23f   :  { %23 = sbr.rel (!%p21_p4) target bundleno = 18 (0x12), region = 98 }
 0x242   : > { %s1699_s0 = smov %s1695_s19 }

// kernel: pcn_block_forward.2
= control target key start
LH: loop header
LB: loop body
LE: loop exit
PB: predicated region body
PF: predicated region fallthrough
CT: control target
= control target key end

     0   :  { %s4978_s12 = smov 0   ;;  %s5784_s0 = inlined_call_operand.vmem [shape: bf16[48,9,8], index: 0, kind: input, shape index: {}]   ;;  %s5785_s1 = inlined_call_operand.vmem [shape: bf16[24,32], index: 1, kind: input, shape index: {}]   ;;  %s5786_s2 = inlined_call_operand.vmem [shape: f32[1,32], index: 2, kind: input, shape index: {}]   ;;  %s5787_s3 = inlined_call_operand.vmem [shape: bf16[240,16], index: 3, kind: output, shape index: {}]  }
   0x1 LB: > { %s4559_s13 = sadd.s32 4294967295, %s4952_s12   ;;  %p4563_p0 = scmp.ge.s32.totalorder %s4952_s12, 1  ;;  %s4952_s12 = sphi %s4978_s12, %s13_s12  }
   0x2   : > { %p139_p1 = scmp.lt.s32.totalorder %s4952_s12, 3 }
   0x4   : > { %p140_p2 = pnand %p4563_p0, %p139_p1 }
   0x5   : > { %s164_s14 = smul.u32 (!%p140_p2), 24, %s4559_s13  ;;  %v237_v0 = vlaneseq (!%p140_p2)  ;;  %v4954_v1 = vmov (!%p140_p2), 1966171168   ;;  %s4955_s19 = smov (!%p140_p2), 8   ;;  %vm4083_vm0 = vcmask (!%p140_p2), 64512   ;;  %vm4161_vm1 = vcmask (!%p140_p2), 1043456  }
   0x6   : > { %143 = sbr.rel (%p140_p2) target bundleno = 656 (0x290), region = 32  ;;  %v235_v2 = vunpack.c.l.s4 (!%p140_p2), %v4954_v1  ;;  %s4956_s22 = smov (!%p140_p2), 16   ;;  %vm4108_vm2 = vcmask (!%p140_p2), 130048   ;;  %vm4144_vm3 = vcmask (!%p140_p2), 195584   ;;  %vm4487_vm4 = vcmask (!%p140_p2), 125952  }
   0x7   : > { %p165_p3 = scmp.lt.s32.totalorder (!%p140_p2), %s164_s14, 47  ;;  %v238_v3 = vshrl.u32 (!%p140_p2), %v237_v0, 7  ;;  %s4957_s27 = smov (!%p140_p2), 112  }
   0x8   : > { %v236_v4 = vunpack.c.0.s8 (!%p140_p2), %v235_v2  ;;  %s171_s28 = smul.u32 (!%p140_p2), 15, %s4559_s13 }
   0xa   : > { %v4988_v5 = vsub.s32 (!%p140_p2), %v236_v4, %v238_v3  ;;  %p172_p4 = scmp.lt.s32.totalorder (!%p140_p2), %s171_s28, 29 }
   0xd   : > { %s5789_s14 = smov (!%p165_p3, %s164_s14), 47  ;;  %s5791_s28 = smov (!%p172_p4, %s171_s28), 29 }
   0xe   : > { %s4820_s15 = sshll.u32 %s5789_s14, 3  ;;  %s4566_s29 = sshll.u32 %s5791_s28, 2 }
   0xf   : > { %s4993_s18 = scalar_lea.vmem %s5784_s0, %s4820_s15  ;;  %s5735_s5 = scalar_lea.vmem %s5787_s3, %s4566_s29 }
  0x10   : > { %v4613_v6 = vld.sshfl [vmem:[%s4993_s18 + $0xb0] sm:$0x32 pattern:$0x75316420] }
  0x11   : > { %v4614_v7 = vld.sshfl [vmem:[%s4993_s18 + $0xb8] sm:$0x32 pattern:$0x75316420]  ;;  %v1481_v8 = vcombine.high %v4613_v6, %v4613_v6  ;;  %v1488_v9 = vrot.slane %v4613_v6, %v4988_v5 }
  0x12   : > { %v1505_v10 = vcombine.high %v4614_v7, %v4614_v7  ;;  %v1512_v11 = vrot.slane %v4614_v7, %v4988_v5  ;;  %v4591_v12 = vld.sshfl [vmem:[%s4993_s18] sm:$0x32 pattern:$0x75316420] }
  0x13   : > { %v5001_v13 = vrot.slane %v1481_v8, %v4988_v5  ;;  %v1496_v14 = vcombine.high %v1488_v9, %v1488_v9  ;;  %v4592_v15 = vld.sshfl [vmem:[%s4993_s18 + $0x8] sm:$0x32 pattern:$0x75316420]  ;;  %v953_v16 = vcombine.high %v4591_v12, %v4591_v12  ;;  %v960_v17 = vrot.slane %v4591_v12, %v4988_v5 }
  0x14   : > { %v1519_v18 = vrot.slane %v1505_v10, %v4988_v5  ;;  %v1520_v19 = vcombine.high %v1512_v11, %v1512_v11  ;;  %v4593_v20 = vld.sshfl [vmem:[%s4993_s18 + $0x10] sm:$0x32 pattern:$0x75316420]  ;;  %v977_v21 = vcombine.high %v4592_v15, %v4592_v15  ;;  %v984_v22 = vrot.slane %v4592_v15, %v4988_v5 }
  0x15   : > { %v1497_v23 = vcombine.high %v5001_v13, %v5001_v13  ;;  %v967_v24 = vrot.slane %v953_v16, %v4988_v5  ;;  %v968_v25 = vcombine.high %v960_v17, %v960_v17  ;;  %v1001_v26 = vcombine.high %v4593_v20, %v4593_v20  ;;  %v4594_v30 = vld.sshfl [vmem:[%s4993_s18 + $0x18] sm:$0x32 pattern:$0x75316420] }
  0x16   : > { %v1521_v27 = vcombine.high %v1519_v18, %v1519_v18  ;;  %v1638_v28 = vunpack.i.h.s16 %v1519_v18  ;;  %v1640_v29 = vunpack.i.h.s16 %v1520_v19  ;;  %v991_v31 = vrot.slane %v977_v21, %v4988_v5  ;;  %v4595_v44 = vld.sshfl [vmem:[%s4993_s18 + $0x20] sm:$0x32 pattern:$0x75316420] }
  0x17   : > { %v4732_v32 = vpack.i.b16 %v1519_v18, %v1497_v23  ;;  %v969_v33 = vcombine.high %v967_v24, %v967_v24  ;;  %v992_v34 = vcombine.high %v984_v22, %v984_v22  ;;  %v1008_v35 = vrot.slane %v4593_v20, %v4988_v5  ;;  %v4596_v55 = vld.sshfl [vmem:[%s4993_s18 + $0x28] sm:$0x32 pattern:$0x75316420] }
  0x18   : > { %v4733_v36 = vpack.i.b16 %v1520_v19, %v1638_v28  ;;  %v4734_v37 = vpack.i.b16 %v1521_v27, %v1640_v29  ;;  %v993_v38 = vcombine.high %v991_v31, %v991_v31  ;;  %v1015_v39 = vrot.slane %v1001_v26, %v4988_v5  ;;  %v5025_v4 = vld.sshfl [vmem:[%s4993_s18 + $0x30] sm:$0x32 pattern:$0x75316420] }
  0x19   : > { %v3600_v40 = vcombine.low %v1496_v14, %v4732_v32  ;;  %v1016_v41 = vcombine.high %v1008_v35, %v1008_v35  ;;  %v1025_v42 = vcombine.high %v4594_v30, %v4594_v30  ;;  %v1528_v43 = vunpack.i.h.s16 %v991_v31  ;;  %v5037_v21 = vld.sshfl [vmem:[%s4993_s18 + $0x60] sm:$0x32 pattern:$0x75316420] }
  0x1a   : > { %v3601_v45 = vcombine.low %v4733_v36, %v4734_v37  ;;  %v1017_v46 = vcombine.high %v1015_v39, %v1015_v39  ;;  %v1530_v47 = vunpack.i.h.s16 %v992_v34  ;;  %v4699_v48 = vpack.i.b16 %v991_v31, %v969_v33  ;;  %v4604_v26 = vld.sshfl [vmem:[%s4993_s18 + $0x68] sm:$0x32 pattern:$0x75316420] }
  0x1b   : > { %v3608_v49 = vrot.slane %v3600_v40, %v4988_v5  ;;  %v1039_v50 = vrot.slane %v1025_v42, %v4988_v5  ;;  %v4700_v51 = vpack.i.b16 %v992_v34, %v1528_v43  ;;  %v3257_v52 = vcombine.low %v967_v24, %v968_v25  ;;  %v4605_v37 = vld.sshfl [vmem:[%s4993_s18 + $0x70] sm:$0x32 pattern:$0x75316420] }
  0x1c   : > { %v3615_v53 = vrot.slane %v3601_v45, %v4988_v5  ;;  %v4701_v54 = vpack.i.b16 %v993_v38, %v1530_v47  ;;  %v1032_v56 = vrot.slane %v4594_v30, %v4988_v5  ;;  %v1049_v57 = vcombine.high %v4595_v44, %v4595_v44 }
  0x1d   : > { %v4702_v58 = vpack.i.b16 %v1039_v50, %v1017_v46  ;;  %v3258_v59 = vcombine.low %v4699_v48, %v4700_v51  ;;  %v3267_v60 = vrot.slane %v3257_v52, %v4988_v5  ;;  %v1041_v61 = vcombine.high %v1039_v50, %v1039_v50  ;;  %v4606_v46 = vld.sshfl [vmem:[%s4993_s18 + $0x78] sm:$0x32 pattern:$0x75316420] }
  0x1e   : > { %v3616_v62 = vcombine.low %v3608_v49, %v3615_v53  ;;  %v3259_v63 = vcombine.low %v4701_v54, %v1015_v39  ;;  %v1040_v0 = vcombine.high %v1032_v56, %v1032_v56  ;;  %v1056_v1 = vrot.slane %v4595_v44, %v4988_v5 }
  0x1f   : > { %v3260_v2 = vcombine.low %v1016_v41, %v4702_v58  ;;  %v3274_v3 = vrot.slane %v3258_v59, %v4988_v5  ;;  %v1063_v6 = vrot.slane %v1049_v57, %v4988_v5  ;;  %v1073_v7 = vcombine.high %v4596_v55, %v4596_v55 }
  0x20   : > { %v3623_v8 = vrot.slane %v3616_v62, %v4988_v5  ;;  %v3281_v9 = vrot.slane %v3259_v63, %v4988_v5  ;;  %v1064_v10 = vcombine.high %v1056_v1, %v1056_v1  ;;  %v1080_v11 = vrot.slane %v4596_v55, %v4988_v5 }
  0x21   : > { %v3288_v12 = vrot.slane %v3260_v2, %v4988_v5  ;;  %v3289_v14 = vcombine.low %v3267_v60, %v3274_v3  ;;  %v1065_v15 = vcombine.high %v1063_v6, %v1063_v6  ;;  %v1087_v16 = vrot.slane %v1073_v7, %v4988_v5 }
  0x22   : > { %3638 = vrot.lane.b32.xlu1 %v3623_v8, %s4955_s19  ;;  %v1088_v17 = vcombine.high %v1080_v11, %v1080_v11  ;;  %v1097_v18 = vcombine.high %v5025_v4, %v5025_v4  ;;  %v1538_v19 = vunpack.i.h.s16 %v1039_v50  ;;  %v1540_v20 = vunpack.i.h.s16 %v1040_v0 }
  0x23   : > { %v3290_v22 = vcombine.low %v3281_v9, %v3288_v12  ;;  %v3297_v23 = vrot.slane %v3289_v14, %v4988_v5  ;;  %v1089_v24 = vcombine.high %v1087_v16, %v1087_v16  ;;  %v1548_v25 = vunpack.i.h.s16 %v1087_v16 }
  0x24   : > { %v5042_v27 = vrot.slane %v1097_v18, %v4988_v5  ;;  %v1550_v28 = vunpack.i.h.s16 %v1088_v17  ;;  %v4703_v29 = vpack.i.b16 %v1040_v0, %v1538_v19  ;;  %v4704_v30 = vpack.i.b16 %v1041_v61, %v1540_v20  ;;  %v4607_v61 = vld.sshfl [vmem:[%s4993_s18 + $0x80] sm:$0x32 pattern:$0x75316420] }
  0x25   : > { %v3304_v31 = vrot.slane %v3290_v22, %v4988_v5  ;;  %v4705_v32 = vpack.i.b16 %v1087_v16, %v1065_v15  ;;  %v4706_v33 = vpack.i.b16 %v1088_v17, %v1548_v25  ;;  %v3307_v34 = vcombine.low %v1063_v6, %v1064_v10  ;;  %v4608_v17 = vld.sshfl [vmem:[%s4993_s18 + $0x88] sm:$0x32 pattern:$0x75316420] }
  0x26   : > { %v4707_v35 = vpack.i.b16 %v1089_v24, %v1550_v28  ;;  %v3306_v36 = vcombine.low %v4703_v29, %v4704_v30  ;;  %v1241_v38 = vcombine.high %v5037_v21, %v5037_v21  ;;  %v1265_v39 = vcombine.high %v4604_v26, %v4604_v26 }
  0x27   : > { %v3305_v40 = vcombine.low %v3297_v23, %v3304_v31  ;;  %v3308_v41 = vcombine.low %v4705_v32, %v4706_v33  ;;  %v3323_v42 = vrot.slane %v3307_v34, %v4988_v5  ;;  %v1272_v43 = vrot.slane %v4604_v26, %v4988_v5  ;;  %v4609_v26 = vld.sshfl [vmem:[%s4993_s18 + $0x90] sm:$0x32 pattern:$0x75316420] }
  0x28   : > { %v3309_v44 = vcombine.low %v4707_v35, %v5042_v27  ;;  %v3316_v45 = vrot.slane %v3306_v36, %v4988_v5  ;;  %v5054_v47 = vrot.slane %v1241_v38, %v4988_v5  ;;  %v1279_v48 = vrot.slane %v1265_v39, %v4988_v5  ;;  %v5077_v31 = vld.sshfl [vmem:[%s4993_s18 + $0x98] sm:$0x32 pattern:$0x75316420] }
  0x29   : > { %3624 = vrot.lane.b32.xlu0 %v3305_v40, %s4955_s19  ;;  %v3330_v49 = vrot.slane %v3308_v41, %v4988_v5  ;;  %v1280_v50 = vcombine.high %v1272_v43, %v1272_v43  ;;  %v1289_v51 = vcombine.high %v4605_v37, %v4605_v37  ;;  %v1296_v52 = vrot.slane %v4605_v37, %v4988_v5 }
  0x2a   : > { %v3337_v53 = vrot.slane %v3309_v44, %v4988_v5  ;;  %v3338_v54 = vcombine.low %v3316_v45, %v3323_v42  ;;  %v1257_v55 = vcombine.high %v5054_v47, %v5054_v47  ;;  %v1281_v56 = vcombine.high %v1279_v48, %v1279_v48 }
  0x2b   : > { %v1303_v57 = vrot.slane %v1289_v51, %v4988_v5  ;;  %v1304_v58 = vcombine.high %v1296_v52, %v1296_v52  ;;  %v1313_v59 = vcombine.high %v4606_v46, %v4606_v46  ;;  %v1320_v60 = vrot.slane %v4606_v46, %v4988_v5 }
  0x2c   : > { %v3339_v62 = vcombine.low %v3330_v49, %v3337_v53  ;;  %v3346_v63 = vrot.slane %v3338_v54, %v4988_v5  ;;  %v1588_v0 = vunpack.i.h.s16 %v1279_v48  ;;  %v1590_v1 = vunpack.i.h.s16 %v1280_v50 }
  0x2d   : > { %v1305_v2 = vcombine.high %v1303_v57, %v1303_v57  ;;  %v1327_v3 = vrot.slane %v1313_v59, %v4988_v5  ;;  %v1328_v6 = vcombine.high %v1320_v60, %v1320_v60  ;;  %v4717_v7 = vpack.i.b16 %v1279_v48, %v1257_v55  ;;  %v4598_v55 = vld.sshfl [vmem:[%s4993_s18 + $0x38] sm:$0x32 pattern:$0x75316420] }
  0x2e   : > { %v3353_v8 = vrot.slane %v3339_v62, %v4988_v5  ;;  %v4718_v9 = vpack.i.b16 %v1280_v50, %v1588_v0  ;;  %v4719_v10 = vpack.i.b16 %v1281_v56, %v1590_v1  ;;  %v1337_v11 = vcombine.high %v4607_v61, %v4607_v61  ;;  %v4599_v59 = vld.sshfl [vmem:[%s4993_s18 + $0x40] sm:$0x32 pattern:$0x75316420] }
  0x2f   : > { %v1329_v12 = vcombine.high %v1327_v3, %v1327_v3  ;;  %v1598_v14 = vunpack.i.h.s16 %v1327_v3  ;;  %v1600_v15 = vunpack.i.h.s16 %v1328_v6  ;;  %v4720_v16 = vpack.i.b16 %v1327_v3, %v1305_v2  ;;  %v4600_v2 = vld.sshfl [vmem:[%s4993_s18 + $0x48] sm:$0x32 pattern:$0x75316420] }
  0x30   : > { %v3354_v18 = vcombine.low %v3346_v63, %v3353_v8  ;;  %v3453_v19 = vcombine.low %v4717_v7, %v4718_v9  ;;  %v3454_v20 = vcombine.low %v4719_v10, %v1303_v57  ;;  %v1344_v22 = vrot.slane %v4607_v61, %v4988_v5 }
  0x31   : > { %v4721_v23 = vpack.i.b16 %v1328_v6, %v1598_v14  ;;  %v4722_v24 = vpack.i.b16 %v1329_v12, %v1600_v15  ;;  %v3455_v25 = vcombine.low %v1304_v58, %v4720_v16  ;;  %v1351_v28 = vrot.slane %v1337_v11, %v4988_v5 }
  0x32   : > { %3626 = vrot.lane.b32.xlu1 %v3354_v18, %s4955_s19  ;;  %v3463_v29 = vrot.slane %v3453_v19, %v4988_v5  ;;  %v3470_v30 = vrot.slane %v3454_v20, %v4988_v5  ;;  %v1352_v32 = vcombine.high %v1344_v22, %v1344_v22  ;;  %v1361_v33 = vcombine.high %v4608_v17, %v4608_v17 }
  0x33   : > { %v3456_v34 = vcombine.low %v4721_v23, %v4722_v24  ;;  %v3477_v35 = vrot.slane %v3455_v25, %v4988_v5  ;;  %v1353_v36 = vcombine.high %v1351_v28, %v1351_v28  ;;  %v1368_v37 = vrot.slane %v4608_v17, %v4988_v5 }
  0x34   : > { %v3485_v38 = vcombine.low %v3463_v29, %v3470_v30  ;;  %v1375_v39 = vrot.slane %v1361_v33, %v4988_v5  ;;  %v1385_v40 = vcombine.high %v4609_v26, %v4609_v26  ;;  %v1392_v41 = vrot.slane %v4609_v26, %v4988_v5 }
  0x35   : > { %v3484_v42 = vrot.slane %v3456_v34, %v4988_v5  ;;  %v1376_v43 = vcombine.high %v1368_v37, %v1368_v37  ;;  %v1409_v44 = vcombine.high %v5077_v31, %v5077_v31  ;;  %v3502_v45 = vcombine.low %v1351_v28, %v1352_v32  ;;  %v4611_v34 = vld.sshfl [vmem:[%s4993_s18 + $0xa0] sm:$0x32 pattern:$0x75316420] }
  0x36   : > { %v3493_v46 = vrot.slane %v3485_v38, %v4988_v5  ;;  %v1377_v48 = vcombine.high %v1375_v39, %v1375_v39  ;;  %v1399_v49 = vrot.slane %v1385_v40, %v4988_v5  ;;  %v1400_v50 = vcombine.high %v1392_v41, %v1392_v41 }
  0x37   : > { %v3486_v51 = vcombine.low %v3477_v35, %v3484_v42  ;;  %v5089_v52 = vrot.slane %v1409_v44, %v4988_v5  ;;  %v1608_v53 = vunpack.i.h.s16 %v1375_v39  ;;  %v1610_v54 = vunpack.i.h.s16 %v1376_v43  ;;  %v4612_v44 = vld.sshfl [vmem:[%s4993_s18 + $0xa8] sm:$0x32 pattern:$0x75316420] }
  0x38   : > { %v1401_v56 = vcombine.high %v1399_v49, %v1399_v49  ;;  %v4723_v57 = vpack.i.b16 %v1375_v39, %v1353_v36  ;;  %v3512_v58 = vrot.slane %v3502_v45, %v4988_v5  ;;  %v1104_v60 = vrot.slane %v5025_v4, %v4988_v5 }
  0x39   : > { %v3500_v61 = vrot.slane %v3486_v51, %v4988_v5  ;;  %v4724_v62 = vpack.i.b16 %v1376_v43, %v1608_v53  ;;  %v4725_v63 = vpack.i.b16 %v1377_v48, %v1610_v54  ;;  %v1113_v0 = vcombine.high %v5042_v27, %v5042_v27 }
  0x3a   : > { %v4726_v1 = vpack.i.b16 %v5089_v52, %v1401_v56  ;;  %v1112_v3 = vcombine.high %v1104_v60, %v1104_v60  ;;  %v1121_v6 = vcombine.high %v4598_v55, %v4598_v55  ;;  %v1128_v7 = vrot.slane %v4598_v55, %v4988_v5 }
  0x3b   : > { %v3501_v8 = vcombine.low %v3493_v46, %v3500_v61  ;;  %v3503_v9 = vcombine.low %v4723_v57, %v4724_v62  ;;  %v3504_v10 = vcombine.low %v4725_v63, %v1399_v49  ;;  %v1145_v11 = vcombine.high %v4599_v59, %v4599_v59 }
  0x3c   : > { %v3505_v12 = vcombine.low %v1400_v50, %v4726_v1  ;;  %v1135_v4 = vrot.slane %v1121_v6, %v4988_v5  ;;  %v1136_v14 = vcombine.high %v1128_v7, %v1128_v7  ;;  %v1152_v15 = vrot.slane %v4599_v59, %v4988_v5 }
  0x3d   : > { %3632 = vrot.lane.b32.xlu0 %v3501_v8, %s4955_s19  ;;  %v3519_v27 = vrot.slane %v3503_v9, %v4988_v5  ;;  %v3526_v16 = vrot.slane %v3504_v10, %v4988_v5  ;;  %v1159_v17 = vrot.slane %v1145_v11, %v4988_v5  ;;  %v1169_v18 = vcombine.high %v4600_v2, %v4600_v2  ;;  %v4601_v10 = vld.sshfl [vmem:[%s4993_s18 + $0x50] sm:$0x32 pattern:$0x75316420] }
  0x3e   : > { %v3533_v19 = vrot.slane %v3505_v12, %v4988_v5  ;;  %v1137_v20 = vcombine.high %v1135_v4, %v1135_v4  ;;  %v1160_v22 = vcombine.high %v1152_v15, %v1152_v15  ;;  %v1176_v23 = vrot.slane %v4600_v2, %v4988_v5  ;;  %v4602_v15 = vld.sshfl [vmem:[%s4993_s18 + $0x58] sm:$0x32 pattern:$0x75316420] }
  0x3f   : > { %v3534_v24 = vcombine.low %v3512_v58, %v3519_v27  ;;  %v1161_v25 = vcombine.high %v1159_v17, %v1159_v17  ;;  %v5111_v26 = vrot.slane %v1169_v18, %v4988_v5  ;;  %v1558_v28 = vunpack.i.h.s16 %v1135_v4 }
  0x40   : > { %v3535_v29 = vcombine.low %v3526_v16, %v3533_v19  ;;  %v5113_v30 = vcombine.high %v1176_v23, %v1176_v23  ;;  %v1560_v32 = vunpack.i.h.s16 %v1136_v14  ;;  %v4708_v33 = vpack.i.b16 %v1135_v4, %v1113_v0 }
  0x41   : > { %v3542_v35 = vrot.slane %v3534_v24, %v4988_v5  ;;  %v1568_v36 = vunpack.i.h.s16 %v5111_v26  ;;  %v4709_v37 = vpack.i.b16 %v1136_v14, %v1558_v28  ;;  %v4711_v38 = vpack.i.b16 %v5111_v26, %v1161_v25 }
  0x42   : > { %v3549_v39 = vrot.slane %v3535_v29, %v4988_v5  ;;  %v4710_v40 = vpack.i.b16 %v1137_v20, %v1560_v32  ;;  %v3355_v41 = vcombine.low %v1112_v3, %v4708_v33  ;;  %v3357_v42 = vcombine.low %v1159_v17, %v1160_v22 }
  0x43   : > { %v4712_v43 = vpack.i.b16 %v5113_v30, %v1568_v36  ;;  %v1416_v45 = vrot.slane %v5077_v31, %v4988_v5  ;;  %v1425_v46 = vcombine.high %v5089_v52, %v5089_v52  ;;  %v1433_v48 = vcombine.high %v4611_v34, %v4611_v34 }
  0x44   : > { %v3550_v49 = vcombine.low %v3542_v35, %v3549_v39  ;;  %v3356_v50 = vcombine.low %v4709_v37, %v4710_v40  ;;  %v3365_v51 = vrot.slane %v3355_v41, %v4988_v5  ;;  %v3379_v53 = vrot.slane %v3357_v42, %v4988_v5  ;;  %v4640_v39 = vld.sshfl [vmem:[%s4993_s18 + $0x64] sm:$0x1 pattern:$0x75316420] }
  0x45   : > { %v3358_v54 = vcombine.low %v4711_v38, %v4712_v43  ;;  %v1424_v55 = vcombine.high %v1416_v45, %v1416_v45  ;;  %v1440_v56 = vrot.slane %v4611_v34, %v4988_v5  ;;  %v1447_v57 = vrot.slane %v1433_v48, %v4988_v5  ;;  %v4641_v43 = vld.sshfl [vmem:[%s4993_s18 + $0x68] sm:$0x22 pattern:$0x75316420] }
  0x46   : > { %3634 = vrot.lane.b32.xlu1 %v3550_v49, %s4955_s19  ;;  %v3372_v31 = vrot.slane %v3356_v50, %v4988_v5  ;;  %v1457_v58 = vcombine.high %v4612_v44, %v4612_v44  ;;  %v1464_v59 = vrot.slane %v4612_v44, %v4988_v5  ;;  %v1618_v60 = vunpack.i.h.s16 %v5089_v52 }
  0x47   : > { %v3386_v61 = vrot.slane %v3358_v54, %v4988_v5  ;;  %v1448_v62 = vcombine.high %v1440_v56, %v1440_v56  ;;  %v1449_v63 = vcombine.high %v1447_v57, %v1447_v57  ;;  %v1620_v0 = vunpack.i.h.s16 %v1424_v55  ;;  %v4643_v56 = vld.sshfl [vmem:[%s4993_s18 + $0x70] sm:$0x22 pattern:$0x75316420] }
  0x48   : > { %v3387_v1 = vcombine.low %v3365_v51, %v3372_v31  ;;  %v1471_v2 = vrot.slane %v1457_v58, %v4988_v5  ;;  %v1472_v3 = vcombine.high %v1464_v59, %v1464_v59  ;;  %v4727_v6 = vpack.i.b16 %v1424_v55, %v1618_v60 }
  0x49   : > { %v3388_v7 = vcombine.low %v3379_v53, %v3386_v61  ;;  %v4728_v8 = vpack.i.b16 %v1425_v46, %v1620_v0  ;;  %v3552_v9 = vcombine.low %v1447_v57, %v1448_v62  ;;  %v1185_v11 = vcombine.high %v5111_v26, %v5111_v26  ;;  %v4642_v53 = vld.sshfl [vmem:[%s4993_s18 + $0x6c] sm:$0x1 pattern:$0x75316420] }
  0x4a   : > { %v3395_v52 = vrot.slane %v3387_v1, %v4988_v5  ;;  %v1473_v12 = vcombine.high %v1471_v2, %v1471_v2  ;;  %v1628_v4 = vunpack.i.h.s16 %v1471_v2  ;;  %v1630_v14 = vunpack.i.h.s16 %v1472_v3  ;;  %v4644_v61 = vld.sshfl [vmem:[%s4993_s18 + $0x74] sm:$0x1 pattern:$0x75316420] }
  0x4b   : > { %v3402_v27 = vrot.slane %v3388_v7, %v4988_v5  ;;  %v4729_v16 = vpack.i.b16 %v1471_v2, %v1449_v63  ;;  %v3551_v17 = vcombine.low %v4727_v6, %v4728_v8  ;;  %v3568_v18 = vrot.slane %v3552_v9, %v4988_v5  ;;  %v4645_v63 = vld.sshfl [vmem:[%s4993_s18 + $0x78] sm:$0x22 pattern:$0x75316420] }
  0x4c   : > { %v4730_v19 = vpack.i.b16 %v1472_v3, %v1628_v4  ;;  %v4731_v20 = vpack.i.b16 %v1473_v12, %v1630_v14  ;;  %v1193_v22 = vcombine.high %v4601_v10, %v4601_v10  ;;  %v1200_v23 = vrot.slane %v4601_v10, %v4988_v5  ;;  %v4646_v8 = vld.sshfl [vmem:[%s4993_s18 + $0x7c] sm:$0x1 pattern:$0x75316420] }
  0x4d   : > { %v3403_v24 = vcombine.low %v3395_v52, %v3402_v27  ;;  %v3561_v25 = vrot.slane %v3551_v17, %v4988_v5  ;;  %v1217_v26 = vcombine.high %v4602_v15, %v4602_v15  ;;  %v1224_v28 = vrot.slane %v4602_v15, %v4988_v5 }
  0x4e   : > { %v3553_v29 = vcombine.low %v4729_v16, %v4730_v19  ;;  %v3554_v32 = vcombine.low %v4731_v20, %v5001_v13  ;;  %v1207_v33 = vrot.slane %v1193_v22, %v4988_v5  ;;  %v1208_v34 = vcombine.high %v1200_v23, %v1200_v23  ;;  %v5180_v19 = vld.sshfl [vmem:[%s4993_s18] sm:$0x22 pattern:$0x75316420] }
  0x4f   : > { %3628 = vrot.lane.b32.xlu0 %v3403_v24, %s4955_s19  ;;  %v3583_v35 = vcombine.low %v3561_v25, %v3568_v18  ;;  %v1231_v36 = vrot.slane %v1217_v26, %v4988_v5  ;;  %v1232_v37 = vcombine.high %v1224_v28, %v1224_v28  ;;  %v1248_v38 = vrot.slane %v5037_v21, %v4988_v5 }
  0x50   : > { %v3575_v40 = vrot.slane %v3553_v29, %v4988_v5  ;;  %v3582_v41 = vrot.slane %v3554_v32, %v4988_v5  ;;  %v1209_v13 = vcombine.high %v1207_v33, %v1207_v33  ;;  %v1570_v42 = vunpack.i.h.s16 %v5113_v30  ;;  %v4616_v32 = vld.sshfl [vmem:[%s4993_s18 + $0x4] sm:$0x1 pattern:$0x75316420] }
  0x51   : > { %v3591_v44 = vrot.slane %v3583_v35, %v4988_v5  ;;  %v1233_v45 = vcombine.high %v1231_v36, %v1231_v36  ;;  %v1256_v46 = vcombine.high %v1248_v38, %v1248_v38  ;;  %v1578_v48 = vunpack.i.h.s16 %v1231_v36 }
  0x52   : > { %v3584_v49 = vcombine.low %v3575_v40, %v3582_v41  ;;  %v1580_v50 = vunpack.i.h.s16 %v1232_v37  ;;  %v4713_v21 = vpack.i.b16 %v1185_v11, %v1570_v42  ;;  %v4714_v51 = vpack.i.b16 %v1231_v36, %v1209_v13  ;;  %v4617_v36 = vld.sshfl [vmem:[%s4993_s18 + $0x8] sm:$0x22 pattern:$0x75316420] }
  0x53   : > { %v4715_v54 = vpack.i.b16 %v1232_v37, %v1578_v48  ;;  %v3407_v55 = vcombine.low %v5054_v47, %v1256_v46  ;;  %v2231_v57 = vrot.slane %v4640_v39, %v4988_v5  ;;  %v2239_v30 = vcombine.high %v4641_v43, %v4641_v43  ;;  %v4618_v41 = vld.sshfl [vmem:[%s4993_s18 + $0xc] sm:$0x1 pattern:$0x75316420] }
  0x54   : > { %v3598_v31 = vrot.slane %v3584_v49, %v4988_v5  ;;  %v4716_v58 = vpack.i.b16 %v1233_v45, %v1580_v50  ;;  %v3404_v59 = vcombine.low %v4713_v21, %v1207_v33  ;;  %v3405_v60 = vcombine.low %v1208_v34, %v4714_v51  ;;  %v4619_v45 = vld.sshfl [vmem:[%s4993_s18 + $0x10] sm:$0x22 pattern:$0x75316420] }
  0x55   : > { %v3435_v62 = vrot.slane %v3407_v55, %v4988_v5  ;;  %v2246_v0 = vrot.slane %v4641_v43, %v4988_v5  ;;  %v2253_v1 = vrot.slane %v2239_v30, %v4988_v5  ;;  %v2269_v47 = vrot.slane %v4642_v53, %v4988_v5  ;;  %v4620_v21 = vld.sshfl [vmem:[%s4993_s18 + $0x14] sm:$0x1 pattern:$0x75316420] }
  0x56   : > { %v3599_v2 = vcombine.low %v3591_v44, %v3598_v31  ;;  %v3406_v3 = vcombine.low %v4715_v54, %v4716_v58  ;;  %v3414_v6 = vrot.slane %v3404_v59, %v4988_v5  ;;  %v3421_v7 = vrot.slane %v3405_v60, %v4988_v5  ;;  %v5199_v55 = vld.sshfl [vmem:[%s4993_s18 + $0x18] sm:$0x22 pattern:$0x75316420] }
  0x57   : > { %v2254_v9 = vcombine.high %v2246_v0, %v2246_v0  ;;  %v2255_v10 = vcombine.high %v2253_v1, %v2253_v1  ;;  %v2277_v11 = vcombine.high %v4643_v56, %v4643_v56  ;;  %v2284_v52 = vrot.slane %v4643_v56, %v4988_v5  ;;  %v4884_v0 = vld [vmem:[%s5785_s1] sm:$0xff]  }
  0x58   : > { %3636 = vrot.lane.b32.xlu1 %v3599_v2, %s4955_s19  ;;  %v3428_v12 = vrot.slane %v3406_v3, %v4988_v5  ;;  %v3436_v4 = vcombine.low %v3414_v6, %v3421_v7  ;;  %v2307_v14 = vrot.slane %v4644_v61, %v4988_v5  ;;  %v2315_v15 = vcombine.high %v4645_v63, %v4645_v63  ;;  %v5215_v6 = vld.sshfl [vmem:[%s4993_s18 + $0x80] sm:$0x22 pattern:$0x75316420] }
  0x59   : > { %v2291_v27 = vrot.slane %v2277_v11, %v4988_v5  ;;  %v2292_v16 = vcombine.high %v2284_v52, %v2284_v52  ;;  %v2322_v17 = vrot.slane %v4645_v63, %v4988_v5  ;;  %v2345_v18 = vrot.slane %v4646_v8, %v4988_v5  ;;  %v4648_v11 = vld.sshfl [vmem:[%s4993_s18 + $0x84] sm:$0x1 pattern:$0x75316420]  ;;  %4866 = vmatprep.subr.bf16.mxu1 %v4884_v0 }
  0x5a   : > { %v3437_v20 = vcombine.low %v3428_v12, %v3435_v62  ;;  %v3444_v22 = vrot.slane %v3436_v4, %v4988_v5  ;;  %v2329_v23 = vrot.slane %v2315_v15, %v4988_v5  ;;  %v2716_v24 = vunpack.i.h.s16 %v2254_v9  ;;  %4846 = vmatprep.subr.bf16.mxu0 %v4884_v0  ;;  %4868 = vmatpush3.bf16.msra.mxu1 %v4884_v0 }
  0x5b   : > { %v2293_v25 = vcombine.high %v2291_v27, %v2291_v27  ;;  %v2330_v26 = vcombine.high %v2322_v17, %v2322_v17  ;;  %v2718_v28 = vunpack.i.h.s16 %v2255_v10  ;;  %v4753_v29 = vpack.i.b16 %v2254_v9, %v2231_v57  ;;  %4847 = vmatpush3.bf16.msra.mxu0 %v4884_v0 }
  0x5c   : > { %v3451_v33 = vrot.slane %v3437_v20, %v4988_v5  ;;  %v2331_v34 = vcombine.high %v2329_v23, %v2329_v23  ;;  %v4754_v35 = vpack.i.b16 %v2255_v10, %v2716_v24  ;;  %v1745_v37 = vcombine.high %v5180_v19, %v5180_v19  ;;  %v4650_v20 = vld.sshfl [vmem:[%s4993_s18 + $0x8c] sm:$0x1 pattern:$0x75316420] }
  0x5d   : > { %v2726_v38 = vunpack.i.h.s16 %v2330_v26  ;;  %v4755_v39 = vpack.i.b16 %v2269_v47, %v2718_v28  ;;  %v4756_v40 = vpack.i.b16 %v2330_v26, %v2307_v14  ;;  %v1752_v13 = vrot.slane %v5180_v19, %v4988_v5 }
  0x5e   : > { %v3452_v42 = vcombine.low %v3444_v22, %v3451_v33  ;;  %v2728_v43 = vunpack.i.h.s16 %v2331_v34  ;;  %v3896_v44 = vcombine.low %v4753_v29, %v4754_v35  ;;  %v1759_v46 = vrot.slane %v1745_v37, %v4988_v5 }
  0x5f   : > { %v4757_v48 = vpack.i.b16 %v2331_v34, %v2726_v38  ;;  %v3897_v49 = vcombine.low %v4755_v39, %v2292_v16  ;;  %v3898_v50 = vcombine.low %v2293_v25, %v4756_v40  ;;  %v1775_v51 = vrot.slane %v4616_v32, %v4988_v5  ;;  %v4651_v32 = vld.sshfl [vmem:[%s4993_s18 + $0x90] sm:$0x22 pattern:$0x75316420] }
  0x60   : > { %3630 = vrot.lane.b32.xlu0 %v3452_v42, %s4955_s19  ;;  %v4758_v53 = vpack.i.b16 %v2345_v18, %v2728_v43  ;;  %v3906_v54 = vrot.slane %v3896_v44, %v4988_v5  ;;  %v1783_v56 = vcombine.high %v4617_v36, %v4617_v36  ;;  %v1790_v57 = vrot.slane %v4617_v36, %v4988_v5  ;;  %v4649_v18 = vld.sshfl [vmem:[%s4993_s18 + $0x88] sm:$0x22 pattern:$0x75316420] }
  0x61   : > { %v3913_v30 = vrot.slane %v3897_v49, %v4988_v5  ;;  %v3920_v31 = vrot.slane %v3898_v50, %v4988_v5  ;;  %v1813_v58 = vrot.slane %v4618_v41, %v4988_v5  ;;  %v1821_v59 = vcombine.high %v4619_v45, %v4619_v45  ;;  %v4652_v34 = vld.sshfl [vmem:[%s4993_s18 + $0x94] sm:$0x1 pattern:$0x75316420] }
  0x62   : > { %v3899_v60 = vcombine.low %v4757_v48, %v4758_v53  ;;  %v1797_v61 = vrot.slane %v1783_v56, %v4988_v5  ;;  %v1798_v62 = vcombine.high %v1790_v57, %v1790_v57  ;;  %v1828_v63 = vrot.slane %v4619_v45, %v4988_v5  ;;  %v5238_v41 = vld.sshfl [vmem:[%s4993_s18 + $0x98] sm:$0x22 pattern:$0x75316420] }
  0x63   : > { %v3928_v1 = vcombine.low %v3906_v54, %v3913_v30  ;;  %v1835_v47 = vrot.slane %v1821_v59, %v4988_v5  ;;  %v1851_v2 = vrot.slane %v4620_v21, %v4988_v5  ;;  %v1866_v3 = vrot.slane %v5199_v55, %v4988_v5  ;;  %v4622_v56 = vld.sshfl [vmem:[%s4993_s18 + $0x1c] sm:$0x1 pattern:$0x75316420] }
  0x64   : > { %v3927_v7 = vrot.slane %v3899_v60, %v4988_v5  ;;  %v1799_v8 = vcombine.high %v1797_v61, %v1797_v61  ;;  %v1836_v9 = vcombine.high %v1828_v63, %v1828_v63  ;;  %v2656_v10 = vunpack.i.h.s16 %v1798_v62  ;;  %v4623_v59 = vld.sshfl [vmem:[%s4993_s18 + $0x20] sm:$0x22 pattern:$0x75316420] }
  0x65   : > { %v3936_v52 = vrot.slane %v3928_v1, %v4988_v5  ;;  %v1837_v12 = vcombine.high %v1835_v47, %v1835_v47  ;;  %v5220_v4 = vcombine.high %v1866_v3, %v1866_v3  ;;  %v4735_v14 = vpack.i.b16 %v1798_v62, %v1775_v51  ;;  %v4624_v47 = vld.sshfl [vmem:[%s4993_s18 + $0x24] sm:$0x1 pattern:$0x75316420] }
  0x66   : > { %v3929_v15 = vcombine.low %v3920_v31, %v3927_v7  ;;  %v2658_v27 = vunpack.i.h.s16 %v1799_v8  ;;  %v4736_v16 = vpack.i.b16 %v1799_v8, %v2656_v10  ;;  %v4771_v17 = vcombine.high %v1752_v13, %v1759_v46 }
  0x67   : > { %v4738_v19 = vpack.i.b16 %v5220_v4, %v1851_v2  ;;  %v2353_v22 = vcombine.high %v5215_v6, %v5215_v6  ;;  %v2360_v23 = vrot.slane %v5215_v6, %v4988_v5  ;;  %v2383_v24 = vrot.slane %v4648_v11, %v4988_v5 }
  0x68   : > { %v3943_v25 = vrot.slane %v3929_v15, %v4988_v5  ;;  %v4737_v26 = vpack.i.b16 %v1813_v58, %v2658_v27  ;;  %v3701_v28 = vcombine.low %v4735_v14, %v4736_v16  ;;  %v3710_v29 = vrot.slane %v4771_v17, %v4988_v5  ;;  %v5268_v17 = vld.sshfl [vmem:[%s4993_s18 + $0x30] sm:$0x22 pattern:$0x75316420] }
  0x69   : > { %v3703_v33 = vcombine.low %v1837_v12, %v4738_v19  ;;  %v2367_v35 = vrot.slane %v2353_v22, %v4988_v5  ;;  %v2391_v36 = vcombine.high %v4649_v18, %v4649_v18  ;;  %v2398_v37 = vrot.slane %v4649_v18, %v4988_v5  ;;  %v4626_v12 = vld.sshfl [vmem:[%s4993_s18 + $0x2c] sm:$0x1 pattern:$0x75316420] }
  0x6a   : > { %v3944_v38 = vcombine.low %v3936_v52, %v3943_v25  ;;  %v3702_v39 = vcombine.low %v4737_v26, %v1836_v9  ;;  %v3717_v40 = vrot.slane %v3701_v28, %v4988_v5  ;;  %v2421_v13 = vrot.slane %v4650_v20, %v4988_v5  ;;  %v4625_v9 = vld.sshfl [vmem:[%s4993_s18 + $0x28] sm:$0x22 pattern:$0x75316420] }
  0x6b   : > { %v3731_v42 = vrot.slane %v3703_v33, %v4988_v5  ;;  %v2405_v43 = vrot.slane %v2391_v36, %v4988_v5  ;;  %v2406_v44 = vcombine.high %v2398_v37, %v2398_v37  ;;  %v2429_v45 = vcombine.high %v4651_v32, %v4651_v32 }
  0x6c   : > { %4075 = vrot.lane.b32.xlu1 %v3944_v38, %s4956_s22  ;;  %v3724_v46 = vrot.slane %v3702_v39, %v4988_v5  ;;  %v3732_v48 = vcombine.low %v3710_v29, %v3717_v40  ;;  %v2436_v49 = vrot.slane %v4651_v32, %v4988_v5  ;;  %v2459_v50 = vrot.slane %v4652_v34, %v4988_v5  ;;  %v4654_v39 = vld.sshfl [vmem:[%s4993_s18 + $0x9c] sm:$0x1 pattern:$0x75316420] }
  0x6d   : > { %v2407_v21 = vcombine.high %v2405_v43, %v2405_v43  ;;  %v2443_v51 = vrot.slane %v2429_v45, %v4988_v5  ;;  %v2474_v53 = vrot.slane %v5238_v41, %v4988_v5  ;;  %v2736_v54 = vunpack.i.h.s16 %v2406_v44 }
  0x6e   : > { %v3733_v57 = vcombine.low %v3724_v46, %v3731_v42  ;;  %v3740_v30 = vrot.slane %v3732_v48, %v4988_v5  ;;  %v2444_v31 = vcombine.high %v2436_v49, %v2436_v49  ;;  %v4759_v58 = vpack.i.b16 %v2406_v44, %v2383_v24  ;;  %v4655_v44 = vld.sshfl [vmem:[%s4993_s18 + $0xa0] sm:$0x22 pattern:$0x75316420] }
  0x6f   : > { %v2445_v60 = vcombine.high %v2443_v51, %v2443_v51  ;;  %v5253_v61 = vcombine.high %v2474_v53, %v2474_v53  ;;  %v2738_v62 = vunpack.i.h.s16 %v2407_v21  ;;  %v4760_v63 = vpack.i.b16 %v2407_v21, %v2736_v54  ;;  %v4656_v49 = vld.sshfl [vmem:[%s4993_s18 + $0xa4] sm:$0x1 pattern:$0x75316420] }
  0x70   : > { %v3747_v0 = vrot.slane %v3733_v57, %v4988_v5  ;;  %v4775_v1 = vcombine.high %v2360_v23, %v2367_v35  ;;  %v1859_v2 = vcombine.high %v5199_v55, %v5199_v55  ;;  %v1889_v3 = vrot.slane %v4622_v56, %v4988_v5  ;;  %v4657_v51 = vld.sshfl [vmem:[%s4993_s18 + $0xa8] sm:$0x22 pattern:$0x75316420] }
  0x71   : > { %v4761_v6 = vpack.i.b16 %v2421_v13, %v2738_v62  ;;  %v4762_v7 = vpack.i.b16 %v5253_v61, %v2459_v50  ;;  %v3946_v8 = vcombine.low %v4759_v58, %v4760_v63  ;;  %v1897_v10 = vcombine.high %v4623_v59, %v4623_v59  ;;  %v5294_v62 = vld.sshfl [vmem:[%s4993_s18 + $0xb0] sm:$0x22 pattern:$0x75316420] }
  0x72   : > { %v3748_v11 = vcombine.low %v3740_v30, %v3747_v0  ;;  %v3955_v52 = vrot.slane %v4775_v1, %v4988_v5  ;;  %v1873_v14 = vrot.slane %v1859_v2, %v4988_v5  ;;  %v1904_v15 = vrot.slane %v4623_v59, %v4988_v5  ;;  %v4658_v30 = vld.sshfl [vmem:[%s4993_s18 + $0xac] sm:$0x1 pattern:$0x75316420] }
  0x73   : > { %v3947_v27 = vcombine.low %v4761_v6, %v2444_v31  ;;  %v3948_v16 = vcombine.low %v2445_v60, %v4762_v7  ;;  %v3962_v55 = vrot.slane %v3946_v8, %v4988_v5  ;;  %v1911_v18 = vrot.slane %v1897_v10, %v4988_v5 }
  0x74   : > { %4067 = vrot.lane.b32.xlu0 %v3748_v11, %s4956_s22  ;;  %v1875_v19 = vcombine.high %v1873_v14, %v1873_v14  ;;  %v1927_v20 = vrot.slane %v4624_v47, %v4988_v5  ;;  %v1935_v22 = vcombine.high %v4625_v9, %v4625_v9  ;;  %v1942_v23 = vrot.slane %v4625_v9, %v4988_v5 }
  0x75   : > { %v3969_v24 = vrot.slane %v3947_v27, %v4988_v5  ;;  %v3976_v25 = vrot.slane %v3948_v16, %v4988_v5  ;;  %v3977_v26 = vcombine.low %v3955_v52, %v3962_v55  ;;  %v1965_v28 = vrot.slane %v4626_v12, %v4988_v5  ;;  %v4628_v16 = vld.sshfl [vmem:[%s4993_s18 + $0x34] sm:$0x1 pattern:$0x75316420] }
  0x76   : > { %v1949_v29 = vrot.slane %v1935_v22, %v4988_v5  ;;  %v1950_v32 = vcombine.high %v1942_v23, %v1942_v23  ;;  %v1980_v33 = vrot.slane %v5268_v17, %v4988_v5  ;;  %v2666_v34 = vunpack.i.h.s16 %v5220_v4  ;;  %v4629_v22 = vld.sshfl [vmem:[%s4993_s18 + $0x38] sm:$0x22 pattern:$0x75316420] }
  0x77   : > { %v3978_v35 = vcombine.low %v3969_v24, %v3976_v25  ;;  %v3985_v36 = vrot.slane %v3977_v26, %v4988_v5  ;;  %v2668_v37 = vunpack.i.h.s16 %v1875_v19  ;;  %v4772_v38 = vcombine.high %v1904_v15, %v1911_v18 }
  0x78   : > { %v1951_v40 = vcombine.high %v1949_v29, %v1949_v29  ;;  %v1988_v13 = vcombine.high %v1980_v33, %v1980_v33  ;;  %v2676_v42 = vunpack.i.h.s16 %v1950_v32  ;;  %v4739_v43 = vpack.i.b16 %v1875_v19, %v2666_v34 }
  0x79   : > { %v3992_v45 = vrot.slane %v3978_v35, %v4988_v5  ;;  %v4740_v46 = vpack.i.b16 %v1889_v3, %v2668_v37  ;;  %v4741_v48 = vpack.i.b16 %v1950_v32, %v1927_v20  ;;  %v3766_v4 = vrot.slane %v4772_v38, %v4988_v5  ;;  %v4630_v32 = vld.sshfl [vmem:[%s4993_s18 + $0x3c] sm:$0x1 pattern:$0x75316420] }
  0x7a   : > { %v2678_v50 = vunpack.i.h.s16 %v1951_v40  ;;  %v4742_v21 = vpack.i.b16 %v1951_v40, %v2676_v42  ;;  %v2467_v53 = vcombine.high %v5238_v41, %v5238_v41  ;;  %v2497_v54 = vrot.slane %v4654_v39, %v4988_v5 }
  0x7b   : > { %v3993_v56 = vcombine.low %v3985_v36, %v3992_v45  ;;  %v3749_v57 = vcombine.low %v4739_v43, %v4740_v46  ;;  %v2505_v31 = vcombine.high %v4655_v44, %v4655_v44  ;;  %v2512_v58 = vrot.slane %v4655_v44, %v4988_v5  ;;  %v4631_v36 = vld.sshfl [vmem:[%s4993_s18 + $0x40] sm:$0x22 pattern:$0x75316420] }
  0x7c   : > { %v4743_v59 = vpack.i.b16 %v1965_v28, %v2678_v50  ;;  %v3751_v60 = vcombine.low %v4741_v48, %v4742_v21  ;;  %v2481_v63 = vrot.slane %v2467_v53, %v4988_v5  ;;  %v2535_v0 = vrot.slane %v4656_v49, %v4988_v5  ;;  %v4633_v46 = vld.sshfl [vmem:[%s4993_s18 + $0x48] sm:$0x22 pattern:$0x75316420] }
  0x7d   : > { %4077 = vrot.lane.b32.xlu1 %v3993_v56, %s4956_s22  ;;  %v3759_v41 = vrot.slane %v3749_v57, %v4988_v5  ;;  %v2519_v1 = vrot.slane %v2505_v31, %v4988_v5  ;;  %v2543_v47 = vcombine.high %v4657_v51, %v4657_v51  ;;  %v2550_v2 = vrot.slane %v4657_v51, %v4988_v5 }
  0x7e   : > { %v3752_v3 = vcombine.low %v4743_v59, %v1988_v13  ;;  %v3773_v6 = vrot.slane %v3751_v60, %v4988_v5  ;;  %v2483_v7 = vcombine.high %v2481_v63, %v2481_v63  ;;  %v2573_v8 = vrot.slane %v4658_v30, %v4988_v5  ;;  %v4632_v13 = vld.sshfl [vmem:[%s4993_s18 + $0x44] sm:$0x1 pattern:$0x75316420] }
  0x7f   : > { %v3781_v9 = vcombine.low %v3759_v41, %v3766_v4  ;;  %v2557_v10 = vrot.slane %v2543_v47, %v4988_v5  ;;  %v2558_v11 = vcombine.high %v2550_v2, %v2550_v2  ;;  %v2588_v52 = vrot.slane %v5294_v62, %v4988_v5  ;;  %v4660_v41 = vld.sshfl [vmem:[%s4993_s18 + $0xb4] sm:$0x1 pattern:$0x75316420] }
  0x80   : > { %v3780_v12 = vrot.slane %v3752_v3, %v4988_v5  ;;  %v2746_v14 = vunpack.i.h.s16 %v5253_v61  ;;  %v2748_v15 = vunpack.i.h.s16 %v2483_v7  ;;  %v4776_v27 = vcombine.high %v2512_v58, %v2519_v1 }
  0x81   : > { %v3789_v55 = vrot.slane %v3781_v9, %v4988_v5  ;;  %v2559_v18 = vcombine.high %v2557_v10, %v2557_v10  ;;  %v2596_v19 = vcombine.high %v2588_v52, %v2588_v52  ;;  %v2756_v20 = vunpack.i.h.s16 %v2558_v11  ;;  %v4662_v10 = vld.sshfl [vmem:[%s4993_s18 + $0xbc] sm:$0x1 pattern:$0x75316420] }
  0x82   : > { %v3782_v23 = vcombine.low %v3773_v6, %v3780_v12  ;;  %v4763_v24 = vpack.i.b16 %v2483_v7, %v2746_v14  ;;  %v4764_v25 = vpack.i.b16 %v2497_v54, %v2748_v15  ;;  %v4765_v26 = vpack.i.b16 %v2558_v11, %v2535_v0  ;;  %v4661_v6 = vld.sshfl [vmem:[%s4993_s18 + $0xb8] sm:$0x22 pattern:$0x75316420] }
  0x83   : > { %v2758_v28 = vunpack.i.h.s16 %v2559_v18  ;;  %v4766_v29 = vpack.i.b16 %v2559_v18, %v2756_v20  ;;  %v4011_v61 = vrot.slane %v4776_v27, %v4988_v5  ;;  %v1973_v33 = vcombine.high %v5268_v17, %v5268_v17  ;;  %v4634_v27 = vld.sshfl [vmem:[%s4993_s18 + $0x4c] sm:$0x1 pattern:$0x75316420] }
  0x84   : > { %v3796_v34 = vrot.slane %v3782_v23, %v4988_v5  ;;  %v3994_v35 = vcombine.low %v4763_v24, %v4764_v25  ;;  %v2003_v37 = vrot.slane %v4628_v16, %v4988_v5  ;;  %v2011_v38 = vcombine.high %v4629_v22, %v4629_v22  ;;  %v4635_v20 = vld.sshfl [vmem:[%s4993_s18 + $0x50] sm:$0x22 pattern:$0x75316420] }
  0x85   : > { %v4767_v39 = vpack.i.b16 %v2573_v8, %v2758_v28  ;;  %v3996_v40 = vcombine.low %v4765_v26, %v4766_v29  ;;  %v1987_v42 = vrot.slane %v1973_v33, %v4988_v5  ;;  %v2018_v43 = vrot.slane %v4629_v22, %v4988_v5  ;;  %v4636_v25 = vld.sshfl [vmem:[%s4993_s18 + $0x54] sm:$0x1 pattern:$0x75316420] }
  0x86   : > { %v3797_v44 = vcombine.low %v3789_v55, %v3796_v34  ;;  %v4004_v45 = vrot.slane %v3994_v35, %v4988_v5  ;;  %v2025_v17 = vrot.slane %v2011_v38, %v4988_v5  ;;  %v2041_v48 = vrot.slane %v4630_v32, %v4988_v5  ;;  %v4637_v32 = vld.sshfl [vmem:[%s4993_s18 + $0x58] sm:$0x22 pattern:$0x75316420] }
  0x87   : > { %v3997_v4 = vcombine.low %v4767_v39, %v2596_v19  ;;  %v4018_v49 = vrot.slane %v3996_v40, %v4988_v5  ;;  %v1989_v50 = vcombine.high %v1987_v42, %v1987_v42  ;;  %v2026_v21 = vcombine.high %v2018_v43, %v2018_v43 }
  0x88   : > { %4069 = vrot.lane.b32.xlu0 %v3797_v44, %s4956_s22  ;;  %v4026_v51 = vcombine.low %v4004_v45, %v4011_v61  ;;  %v2027_v53 = vcombine.high %v2025_v17, %v2025_v17  ;;  %v2049_v54 = vcombine.high %v4631_v36, %v4631_v36  ;;  %v2056_v56 = vrot.slane %v4631_v36, %v4988_v5 }
  0x89   : > { %v4025_v57 = vrot.slane %v3997_v4, %v4988_v5  ;;  %v2079_v30 = vrot.slane %v4632_v13, %v4988_v5  ;;  %v2087_v31 = vcombine.high %v4633_v46, %v4633_v46  ;;  %v2094_v58 = vrot.slane %v4633_v46, %v4988_v5 }
  0x8a   : > { %v4034_v59 = vrot.slane %v4026_v51, %v4988_v5  ;;  %v2063_v60 = vrot.slane %v2049_v54, %v4988_v5  ;;  %v2686_v63 = vunpack.i.h.s16 %v2026_v21  ;;  %v2688_v0 = vunpack.i.h.s16 %v2027_v53 }
  0x8b   : > { %v4027_v1 = vcombine.low %v4018_v49, %v4025_v57  ;;  %v2101_v47 = vrot.slane %v2087_v31, %v4988_v5  ;;  %v2102_v2 = vcombine.high %v2094_v58, %v2094_v58  ;;  %v4744_v3 = vpack.i.b16 %v2026_v21, %v2003_v37  ;;  %v4639_v21 = vld.sshfl [vmem:[%s4993_s18 + $0x60] sm:$0x22 pattern:$0x75316420] }
  0x8c   : > { %v4745_v7 = vpack.i.b16 %v2027_v53, %v2686_v63  ;;  %v4746_v8 = vpack.i.b16 %v2041_v48, %v2688_v0  ;;  %v4773_v9 = vcombine.high %v2056_v56, %v2063_v60  ;;  %v2581_v11 = vcombine.high %v5294_v62, %v5294_v62  ;;  %v4638_v48 = vld.sshfl [vmem:[%s4993_s18 + $0x5c] sm:$0x1 pattern:$0x75316420] }
  0x8d   : > { %v4041_v52 = vrot.slane %v4027_v1, %v4988_v5  ;;  %v5341_v12 = vcombine.high %v2101_v47, %v2101_v47  ;;  %v2696_v14 = vunpack.i.h.s16 %v2102_v2  ;;  %v4747_v15 = vpack.i.b16 %v2102_v2, %v2079_v30 }
  0x8e   : > { %v3798_v16 = vcombine.low %v1989_v50, %v4744_v3  ;;  %v3799_v55 = vcombine.low %v4745_v7, %v4746_v8  ;;  %v3822_v18 = vrot.slane %v4773_v9, %v4988_v5  ;;  %v2595_v19 = vrot.slane %v2581_v11, %v4988_v5 }
  0x8f   : > { %v4042_v22 = vcombine.low %v4034_v59, %v4041_v52  ;;  %v4748_v23 = vpack.i.b16 %v5341_v12, %v2696_v14  ;;  %v2611_v62 = vrot.slane %v4660_v41, %v4988_v5  ;;  %v2619_v24 = vcombine.high %v4661_v6, %v4661_v6 }
  0x90   : > { %v3808_v26 = vrot.slane %v3798_v16, %v4988_v5  ;;  %v3815_v28 = vrot.slane %v3799_v55, %v4988_v5  ;;  %v2597_v29 = vcombine.high %v2595_v19, %v2595_v19  ;;  %v2626_v61 = vrot.slane %v4661_v6, %v4988_v5 }
  0x91   : > { %4079 = vrot.lane.b32.xlu1 %v4042_v22, %s4956_s22  ;;  %v3801_v33 = vcombine.low %v4747_v15, %v4748_v23  ;;  %v2633_v34 = vrot.slane %v2619_v24, %v4988_v5  ;;  %v2649_v35 = vrot.slane %v4662_v10, %v4988_v5  ;;  %v2117_v36 = vrot.slane %v4634_v27, %v4988_v5 }
  0x92   : > { %v3830_v37 = vcombine.low %v3808_v26, %v3815_v28  ;;  %v2634_v38 = vcombine.high %v2626_v61, %v2626_v61  ;;  %v2125_v39 = vcombine.high %v4635_v20, %v4635_v20  ;;  %v2132_v40 = vrot.slane %v4635_v20, %v4988_v5  ;;  %v4582_v61 = vld.sshfl [vmem:[%s4993_s18 + $0x78] sm:$0x13 pattern:$0x75316420] }
  0x93   : > { %v3829_v13 = vrot.slane %v3801_v33, %v4988_v5  ;;  %v2635_v42 = vcombine.high %v2633_v34, %v2633_v34  ;;  %v2155_v43 = vrot.slane %v4636_v25, %v4988_v5  ;;  %v2163_v44 = vcombine.high %v4637_v32, %v4637_v32  ;;  %v4581_v33 = vld.sshfl [vmem:[%s4993_s18 + $0x70] sm:$0x13 pattern:$0x75316420] }
  0x94   : > { %v3838_v45 = vrot.slane %v3830_v37, %v4988_v5  ;;  %v2766_v46 = vunpack.i.h.s16 %v2634_v38  ;;  %v4768_v17 = vpack.i.b16 %v2634_v38, %v2611_v62  ;;  %v2139_v4 = vrot.slane %v2125_v39, %v4988_v5  ;;  %v4567_v38 = vld.sshfl [vmem:[%s4993_s18] sm:$0x13 pattern:$0x75316420] }
  0x95   : > { %v3831_v49 = vcombine.low %v3822_v18, %v3829_v13  ;;  %v2768_v50 = vunpack.i.h.s16 %v2635_v42  ;;  %v2140_v51 = vcombine.high %v2132_v40, %v2132_v40  ;;  %v2170_v53 = vrot.slane %v4637_v32, %v4988_v5  ;;  %v5387_v32 = vld.sshfl [vmem:[%s4993_s18 + $0x60] sm:$0x13 pattern:$0x75316420] }
  0x96   : > { %v4769_v54 = vpack.i.b16 %v2635_v42, %v2766_v46  ;;  %v4043_v56 = vcombine.low %v2597_v29, %v4768_v17  ;;  %v2141_v57 = vcombine.high %v2139_v4, %v2139_v4  ;;  %v2177_v30 = vrot.slane %v2163_v44, %v4988_v5  ;;  %v4580_v29 = vld.sshfl [vmem:[%s4993_s18 + $0x68] sm:$0x13 pattern:$0x75316420] }
  0x97   : > { %v3845_v31 = vrot.slane %v3831_v49, %v4988_v5  ;;  %v4770_v58 = vpack.i.b16 %v2649_v35, %v2768_v50  ;;  %v2178_v59 = vcombine.high %v2170_v53, %v2170_v53  ;;  %v2193_v60 = vrot.slane %v4638_v48, %v4988_v5 }
  0x98   : > { %v4051_v63 = vrot.slane %v4043_v56, %v4988_v5  ;;  %v2179_v0 = vcombine.high %v2177_v30, %v2177_v30  ;;  %v2201_v41 = vcombine.high %v4639_v21, %v4639_v21  ;;  %v2208_v1 = vrot.slane %v4639_v21, %v4988_v5 }
  0x99   : > { %v3846_v47 = vcombine.low %v3838_v45, %v3845_v31  ;;  %v4044_v2 = vcombine.low %v4769_v54, %v4770_v58  ;;  %v2698_v3 = vunpack.i.h.s16 %v5341_v12  ;;  %v2706_v6 = vunpack.i.h.s16 %v2178_v59  ;;  %v4569_v45 = vld.sshfl [vmem:[%s4993_s18 + $0x10] sm:$0x13 pattern:$0x75316420] }
  0x9a   : > { %v2215_v7 = vrot.slane %v2201_v41, %v4988_v5  ;;  %v2708_v8 = vunpack.i.h.s16 %v2179_v0  ;;  %v4750_v9 = vpack.i.b16 %v2178_v59, %v2155_v43  ;;  %v532_v34 = vcombine.high %v4580_v29, %v4580_v29  ;;  %v5413_v31 = vld.sshfl [vmem:[%s4993_s18 + $0x18] sm:$0x13 pattern:$0x75316420] }
  0x9b   : > { %4071 = vrot.lane.b32.xlu0 %v3846_v47, %s4956_s22  ;;  %v4058_v10 = vrot.slane %v4044_v2, %v4988_v5  ;;  %v4749_v11 = vpack.i.b16 %v2117_v36, %v2698_v3  ;;  %v4751_v52 = vpack.i.b16 %v2179_v0, %v2706_v6  ;;  %v578_v35 = vcombine.high %v4582_v61, %v4582_v61  ;;  %v4568_v36 = vld.sshfl [vmem:[%s4993_s18 + $0x8] sm:$0x13 pattern:$0x75316420]  ;;  %v5418_v47 = vpop.permute.xlu1 %3638 }
  0x9c   : > { %v4752_v14 = vpack.i.b16 %v2193_v60, %v2708_v8  ;;  %v3848_v15 = vcombine.low %v2141_v57, %v4750_v9  ;;  %v4774_v27 = vcombine.high %v2208_v1, %v2215_v7  ;;  %v5393_v37 = vrot.slane %v5387_v32, %v4988_v5  ;;  %v4584_v8 = vld.sshfl [vmem:[%s4993_s18 + $0x88] sm:$0x13 pattern:$0x75316420] }
  0x9d   : > { %v4059_v16 = vcombine.low %v4051_v63, %v4058_v10  ;;  %v3847_v55 = vcombine.low %v4749_v11, %v2140_v51  ;;  %v539_v39 = vrot.slane %v4580_v29, %v4988_v5  ;;  %v562_v40 = vrot.slane %v4581_v33, %v4988_v5 }
  0x9e   : > { %v3849_v12 = vcombine.low %v4751_v52, %v4752_v14  ;;  %v3864_v18 = vrot.slane %v3848_v15, %v4988_v5  ;;  %v3878_v19 = vrot.slane %v4774_v27, %v4988_v5  ;;  %v546_v13 = vrot.slane %v532_v34, %v4988_v5  ;;  %v4583_v27 = vld.sshfl [vmem:[%s4993_s18 + $0x80] sm:$0x13 pattern:$0x75316420] }
  0x9f   : > { %v4066_v20 = vrot.slane %v4059_v16, %v4988_v5  ;;  %v3857_v22 = vrot.slane %v3847_v55, %v4988_v5  ;;  %v585_v42 = vrot.slane %v4582_v61, %v4988_v5  ;;  %v592_v43 = vrot.slane %v578_v35, %v4988_v5 }
  0xa0   : > { %v3871_v23 = vrot.slane %v3849_v12, %v4988_v5  ;;  %v256_v44 = vcombine.high %v4568_v36, %v4568_v36  ;;  %v5403_v46 = vrot.slane %v4567_v38, %v4988_v5  ;;  %v263_v17 = vrot.slane %v4568_v36, %v4988_v5 }
  0xa1   : > { %4081 = vrot.lane.b32.xlu1 %v4066_v20, %s4956_s22  ;;  %v3879_v62 = vcombine.low %v3857_v22, %v3864_v18  ;;  %v524_v48 = vcombine.high %v5393_v37, %v5393_v37  ;;  %v547_v4 = vcombine.high %v539_v39, %v539_v39  ;;  %v555_v49 = vcombine.high %v4581_v33, %v4581_v33  ;;  %v4585_v20 = vld.sshfl [vmem:[%s4993_s18 + $0x90] sm:$0x13 pattern:$0x75316420]  ;;  %v5442_v33 = vpop.permute.xlu0 %3624 }
  0xa2   : > { %v3880_v24 = vcombine.low %v3871_v23, %v3878_v19  ;;  %v570_v50 = vcombine.high %v562_v40, %v562_v40  ;;  %v844_v21 = vunpack.i.h.s16 %v539_v39  ;;  %v593_v51 = vcombine.high %v585_v42, %v585_v42 }
  0xa3   : > { %v3887_v25 = vrot.slane %v3879_v62, %v4988_v5  ;;  %v846_v53 = vunpack.i.h.s16 %v546_v13  ;;  %v854_v54 = vunpack.i.h.s16 %v585_v42  ;;  %v856_v56 = vunpack.i.h.s16 %v592_v43 }
  0xa4   : > { %v3894_v26 = vrot.slane %v3880_v24, %v4988_v5  ;;  %v270_v57 = vrot.slane %v256_v44, %v4988_v5  ;;  %v5410_v30 = vrot.slane %v4569_v45, %v4988_v5  ;;  %v233_v58 = vcombine.high %v4567_v38, %v4567_v38  ;;  %v4572_v44 = vld.sshfl [vmem:[%s4993_s18 + $0x28] sm:$0x13 pattern:$0x75316420] }
  0xa5   : > { %v248_v59 = vcombine.high %v5403_v46, %v5403_v46  ;;  %v279_v60 = vcombine.high %v4569_v45, %v4569_v45  ;;  %v271_v63 = vcombine.high %v263_v17, %v263_v17  ;;  %v569_v0 = vrot.slane %v555_v49, %v4988_v5 }
  0xa6   : > { %v3895_v28 = vcombine.low %v3887_v25, %v3894_v26  ;;  %v4681_v41 = vpack.i.b16 %v539_v39, %v524_v48  ;;  %v4682_v1 = vpack.i.b16 %v546_v13, %v844_v21  ;;  %v4683_v2 = vpack.i.b16 %v547_v4, %v846_v53  ;;  %v5432_v25 = vpop.permute.xlu1 %3626  ;;  %v5449_v39 = vld.sshfl [vmem:[%s4993_s18 + $0x98] sm:$0x13 pattern:$0x75316420] }
  0xa7   : > { %v4684_v3 = vpack.i.b16 %v585_v42, %v570_v50  ;;  %v4685_v6 = vpack.i.b16 %v592_v43, %v854_v54  ;;  %v4686_v7 = vpack.i.b16 %v593_v51, %v856_v56  ;;  %v294_v9 = vcombine.high %v5410_v30, %v5410_v30 }
  0xa8   : > { %4073 = vrot.lane.b32.xlu0 %v3895_v28, %s4956_s22  ;;  %v5425_v10 = vrot.slane %v5413_v31, %v4988_v5  ;;  %v784_v11 = vunpack.i.h.s16 %v263_v17  ;;  %v786_v52 = vunpack.i.h.s16 %v270_v57  ;;  %v247_v14 = vrot.slane %v233_v58, %v4988_v5 }
  0xa9   : > { %v293_v15 = vrot.slane %v279_v60, %v4988_v5  ;;  %v624_v16 = vcombine.high %v4584_v8, %v4584_v8  ;;  %v3026_v55 = vcombine.low %v4681_v41, %v4682_v1  ;;  %v3027_v12 = vcombine.low %v4683_v2, %v562_v40 }
  0xaa   : > { %v3028_v18 = vcombine.low %v569_v0, %v4684_v3  ;;  %v3029_v19 = vcombine.low %v4685_v6, %v4686_v7  ;;  %v4663_v22 = vpack.i.b16 %v263_v17, %v248_v59  ;;  %v4664_v23 = vpack.i.b16 %v270_v57, %v784_v11  ;;  %v4571_v59 = vld.sshfl [vmem:[%s4993_s18 + $0x20] sm:$0x13 pattern:$0x75316420] }
  0xab   : > { %v4665_v62 = vpack.i.b16 %v271_v63, %v786_v52  ;;  %v4666_v24 = vpack.i.b16 %v5425_v10, %v294_v9  ;;  %v5435_v26 = vrot.slane %v4583_v27, %v4988_v5  ;;  %v631_v28 = vrot.slane %v4584_v8, %v4988_v5 }
  0xac   : > { %v638_v29 = vrot.slane %v624_v16, %v4988_v5  ;;  %v5440_v61 = vrot.slane %v4585_v20, %v4988_v5  ;;  %v3036_v34 = vrot.slane %v3026_v55, %v4988_v5  ;;  %v3043_v35 = vrot.slane %v3027_v12, %v4988_v5 }
  0xad   : > { %v3050_v36 = vrot.slane %v3028_v18, %v4988_v5  ;;  %v3057_v38 = vrot.slane %v3029_v19, %v4988_v5  ;;  %v2830_v40 = vcombine.low %v5403_v46, %v247_v14  ;;  %v2831_v13 = vcombine.low %v4663_v22, %v4664_v23  ;;  %v4885_v18 = vld [vmem:[%s5785_s1 + $0x8] ss:$0 sps:$4 sm:$0xff]  }
  0xae   : > { %v2832_v42 = vcombine.low %v4665_v62, %v5410_v30  ;;  %v2833_v43 = vcombine.low %v293_v15, %v4666_v24  ;;  %v601_v45 = vcombine.high %v4583_v27, %v4583_v27  ;;  %v616_v17 = vcombine.high %v5435_v26, %v5435_v26  ;;  %4871 = vmatprep.subr.msk.bf16.mxu1 %vm4161_vm1, %v4885_v18 }
  0xaf   : > { %v647_v48 = vcombine.high %v4585_v20, %v4585_v20  ;;  %v864_v4 = vunpack.i.h.s16 %v631_v28  ;;  %v639_v49 = vcombine.high %v631_v28, %v631_v28  ;;  %v662_v50 = vcombine.high %v5440_v61, %v5440_v61  ;;  %v3633_v0 = vpop.permute.xlu0 %3632  ;;  %4870 = vmatprep.subr.msk.bf16.mxu0 %vm4161_vm1, %v4885_v18 }
  0xb0   : > { %v5460_v21 = vrot.slane %v5449_v39, %v4988_v5  ;;  %v866_v46 = vunpack.i.h.s16 %v638_v29  ;;  %v302_v51 = vcombine.high %v5413_v31, %v5413_v31  ;;  %v3058_v53 = vcombine.low %v3036_v34, %v3043_v35 }
  0xb1   : > { %v3059_v54 = vcombine.low %v3050_v36, %v3057_v38  ;;  %v2840_v57 = vrot.slane %v2830_v40, %v4988_v5  ;;  %v2847_v30 = vrot.slane %v2831_v13, %v4988_v5  ;;  %v2854_v58 = vrot.slane %v2832_v42, %v4988_v5  ;;  %v4588_v42 = vld.sshfl [vmem:[%s4993_s18 + $0xa8] sm:$0x13 pattern:$0x75316420] }
  0xb2   : > { %v348_v60 = vcombine.high %v4572_v44, %v4572_v44  ;;  %v2861_v63 = vrot.slane %v2833_v43, %v4988_v5  ;;  %v615_v41 = vrot.slane %v601_v45, %v4988_v5  ;;  %v4687_v1 = vpack.i.b16 %v631_v28, %v616_v17 }
  0xb3   : > { %v4688_v2 = vpack.i.b16 %v638_v29, %v864_v4  ;;  %v661_v31 = vrot.slane %v647_v48, %v4988_v5  ;;  %v4689_v3 = vpack.i.b16 %v639_v49, %v866_v46  ;;  %v4690_v6 = vpack.i.b16 %v5460_v21, %v662_v50  ;;  %v4587_v46 = vld.sshfl [vmem:[%s4993_s18 + $0xa0] sm:$0x13 pattern:$0x75316420] }
  0xb4   : > { %v5475_v7 = vrot.slane %v4571_v59, %v4988_v5  ;;  %v355_v8 = vrot.slane %v4572_v44, %v4988_v5  ;;  %v3066_v9 = vrot.slane %v3058_v53, %v4988_v5  ;;  %v3073_v11 = vrot.slane %v3059_v54, %v4988_v5  ;;  %v5506_v44 = vld.sshfl [vmem:[%s4993_s18 + $0x30] sm:$0x13 pattern:$0x75316420] }
  0xb5   : > { %v2862_v52 = vcombine.low %v2840_v57, %v2847_v30  ;;  %v316_v14 = vrot.slane %v302_v51, %v4988_v5  ;;  %v2863_v15 = vcombine.low %v2854_v58, %v2861_v63  ;;  %v362_v27 = vrot.slane %v348_v60, %v4988_v5 }
  0xb6   : > { %v3075_v16 = vcombine.low %v5435_v26, %v615_v41  ;;  %v3076_v55 = vcombine.low %v4687_v1, %v4688_v2  ;;  %v317_v19 = vcombine.high %v5425_v10, %v5425_v10  ;;  %v325_v20 = vcombine.high %v4571_v59, %v4571_v59 }
  0xb7   : > { %v3077_v22 = vcombine.low %v4689_v3, %v5440_v61  ;;  %v3078_v23 = vcombine.low %v661_v31, %v4690_v6  ;;  %v340_v62 = vcombine.high %v5475_v7, %v5475_v7  ;;  %v363_v24 = vcombine.high %v355_v8, %v355_v8 }
  0xb8   : > { %v5464_v56 = vpop.permute.xlu1 %3634  ;;  %v794_v26 = vunpack.i.h.s16 %v5425_v10  ;;  %v3074_v28 = vcombine.low %v3066_v9, %v3073_v11  ;;  %v2870_v34 = vrot.slane %v2862_v52, %v4988_v5  ;;  %v796_v35 = vunpack.i.h.s16 %v316_v14 }
  0xb9   : > { %v804_v36 = vunpack.i.h.s16 %v355_v8  ;;  %v2877_v38 = vrot.slane %v2863_v15, %v4988_v5  ;;  %v806_v40 = vunpack.i.h.s16 %v362_v27  ;;  %v3085_v61 = vrot.slane %v3075_v16, %v4988_v5  ;;  %v4574_v15 = vld.sshfl [vmem:[%s4993_s18 + $0x38] sm:$0x13 pattern:$0x75316420] }
  0xba   : > { %v3092_v13 = vrot.slane %v3076_v55, %v4988_v5  ;;  %v3099_v10 = vrot.slane %v3077_v22, %v4988_v5  ;;  %v3106_v43 = vrot.slane %v3078_v23, %v4988_v5  ;;  %v339_v45 = vrot.slane %v325_v20, %v4988_v5  ;;  %v5538_v16 = vld.sshfl [vmem:[%s4993_s18 + $0xb0] sm:$0x13 pattern:$0x75316420] }
  0xbb   : > { %v4098_v17 = vsel %vm4083_vm0, %v3074_v28, %v3633_v0  ;;  %v670_v48 = vcombine.high %v5449_v39, %v5449_v39  ;;  %v4163_v49 = vsel %vm4161_vm1, %v4885_v18, 0  ;;  %v4669_v50 = vpack.i.b16 %v355_v8, %v340_v62 }
  0xbc   : > { %v716_v51 = vcombine.high %v4588_v42, %v4588_v42  ;;  %4869 = vmatpush3.bf16.msra.mxu1 %v4163_v49  ;;  %4849 = vmatpush3.bf16.msra.mxu0 %v4163_v49  ;;  %v4667_v54 = vpack.i.b16 %v316_v14, %v794_v26  ;;  %v4668_v57 = vpack.i.b16 %v317_v19, %v796_v35  ;;  %v874_v18 = vunpack.i.h.s16 %v5460_v21 }
  0xbd   : > { %v4670_v30 = vpack.i.b16 %v362_v27, %v804_v36  ;;  %v4671_v58 = vpack.i.b16 %v363_v24, %v806_v40  ;;  %v2878_v39 = vcombine.low %v2870_v34, %v2877_v38  ;;  %v3107_v60 = vcombine.low %v3085_v61, %v3092_v13  ;;  %v4576_v38 = vld.sshfl [vmem:[%s4993_s18 + $0x48] sm:$0x13 pattern:$0x75316420] }
  0xbe   : > { %v3108_v63 = vcombine.low %v3099_v10, %v3106_v43  ;;  %v5520_v0 = vrot.slane %v5506_v44, %v4988_v5  ;;  %v684_v41 = vrot.slane %v670_v48, %v4988_v5  ;;  %v5524_v1 = vrot.slane %v4587_v46, %v4988_v5 }
  0xbf   : > { %v723_v2 = vrot.slane %v4588_v42, %v4988_v5  ;;  %v730_v31 = vrot.slane %v716_v51, %v4988_v5  ;;  %v2879_v3 = vcombine.low %v4667_v54, %v4668_v57  ;;  %v2880_v6 = vcombine.low %v5475_v7, %v339_v45 }
  0xc0   : > { %v2881_v8 = vcombine.low %v4669_v50, %v4670_v30  ;;  %v2882_v9 = vcombine.low %v4671_v58, %v5520_v0  ;;  %v4086_v11 = vsel %vm4083_vm0, %v2878_v39, %v5442_v33  ;;  %v3115_v52 = vrot.slane %v3107_v60, %v4988_v5  ;;  %v4575_v33 = vld.sshfl [vmem:[%s4993_s18 + $0x40] sm:$0x13 pattern:$0x75316420] }
  0xc1   : > { %v5494_v29 = vpop.permute.xlu0 %3628  ;;  %v3122_v14 = vrot.slane %v3108_v63, %v4988_v5  ;;  %v685_v27 = vcombine.high %v5460_v21, %v5460_v21  ;;  %v693_v55 = vcombine.high %v4587_v46, %v4587_v46  ;;  %v708_v7 = vcombine.high %v5524_v1, %v5524_v1  ;;  %v4590_v30 = vld.sshfl [vmem:[%s4993_s18 + $0xb8] sm:$0x13 pattern:$0x75316420] }
  0xc2   : > { %v876_v19 = vunpack.i.h.s16 %v684_v41  ;;  %v731_v22 = vcombine.high %v723_v2, %v723_v2  ;;  %v884_v23 = vunpack.i.h.s16 %v723_v2  ;;  %v886_v62 = vunpack.i.h.s16 %v730_v31 }
  0xc3   : > { %v2889_v26 = vrot.slane %v2879_v3, %v4988_v5  ;;  %v2896_v28 = vrot.slane %v2880_v6, %v4988_v5  ;;  %v394_v34 = vcombine.high %v4574_v15, %v4574_v15  ;;  %v5550_v35 = vrot.slane %v5538_v16, %v4988_v5 }
  0xc4   : > { %v2903_v21 = vrot.slane %v2881_v8, %v4988_v5  ;;  %v2910_v36 = vrot.slane %v2882_v9, %v4988_v5  ;;  %v401_v40 = vrot.slane %v4574_v15, %v4988_v5  ;;  %v3123_v61 = vcombine.low %v3115_v52, %v3122_v14 }
  0xc5   : > { %v5557_v13 = vrot.slane %v4575_v33, %v4988_v5  ;;  %v707_v42 = vrot.slane %v693_v55, %v4988_v5  ;;  %v4691_v10 = vpack.i.b16 %v684_v41, %v874_v18  ;;  %v4692_v43 = vpack.i.b16 %v685_v27, %v876_v19  ;;  %v4578_v19 = vld.sshfl [vmem:[%s4993_s18 + $0x58] sm:$0x13 pattern:$0x75316420] }
  0xc6   : > { %v4693_v45 = vpack.i.b16 %v723_v2, %v708_v7  ;;  %v4695_v48 = vpack.i.b16 %v731_v22, %v886_v62  ;;  %v408_v49 = vrot.slane %v394_v34, %v4988_v5  ;;  %v440_v50 = vcombine.high %v4576_v38, %v4576_v38 }
  0xc7   : > { %v5562_v46 = vrot.slane %v4576_v38, %v4988_v5  ;;  %v2912_v51 = vcombine.low %v2903_v21, %v2910_v36  ;;  %v386_v54 = vcombine.high %v5520_v0, %v5520_v0  ;;  %v417_v57 = vcombine.high %v4575_v33, %v4575_v33 }
  0xc8   : > { %v4101_v58 = vsel %vm4083_vm0, %v3123_v61, %v5464_v56  ;;  %v409_v39 = vcombine.high %v401_v40, %v401_v40  ;;  %v432_v60 = vcombine.high %v5557_v13, %v5557_v13  ;;  %v814_v63 = vunpack.i.h.s16 %v401_v40 }
  0xc9   : > { %v3124_v41 = vcombine.low %v4691_v10, %v4692_v43  ;;  %v3125_v2 = vcombine.low %v5524_v1, %v707_v42  ;;  %v3127_v3 = vcombine.low %v4695_v48, %v5550_v35  ;;  %v5576_v0 = vrot.slane %v440_v50, %v4988_v5 }
  0xca   : > { %v5483_v12 = vpop.permute.xlu1 %3636  ;;  %v816_v6 = vunpack.i.h.s16 %v408_v49  ;;  %v824_v8 = vunpack.i.h.s16 %v5562_v46  ;;  %v762_v9 = vcombine.high %v4590_v30, %v4590_v30  ;;  %v2926_v1 = vrot.slane %v2912_v51, %v4988_v5 }
  0xcb   : > { %v431_v14 = vrot.slane %v417_v57, %v4988_v5  ;;  %v4672_v15 = vpack.i.b16 %v401_v40, %v386_v54  ;;  %v3134_v27 = vrot.slane %v3124_v41, %v4988_v5  ;;  %v3141_v55 = vrot.slane %v3125_v2, %v4988_v5 }
  0xcc   : > { %v3155_v18 = vrot.slane %v3127_v3, %v4988_v5  ;;  %v4674_v33 = vpack.i.b16 %v409_v39, %v816_v6  ;;  %v4675_v22 = vpack.i.b16 %v5562_v46, %v432_v60  ;;  %v739_v62 = vcombine.high %v5538_v16, %v5538_v16 }
  0xcd   : > { %v486_v34 = vcombine.high %v4578_v19, %v4578_v19  ;;  %v776_v21 = vrot.slane %v762_v9, %v4988_v5  ;;  %v3156_v36 = vcombine.low %v3134_v27, %v3141_v55  ;;  %v2930_v42 = vcombine.low %v5557_v13, %v431_v14 }
  0xce   : > { %v753_v43 = vrot.slane %v739_v62, %v4988_v5  ;;  %v455_v39 = vcombine.high %v5562_v46, %v5562_v46  ;;  %v509_v41 = vcombine.high %v5387_v32, %v5387_v32 }
  0xcf   : > { %v500_v50 = vrot.slane %v486_v34, %v4988_v5  ;;  %v3164_v13 = vrot.slane %v3156_v36, %v4988_v5 }
  0xd0   : > { %v523_v46 = vrot.slane %v509_v41, %v4988_v5 }
  0xd2   : > { %v5515_v59 = vpop.permute.xlu0 %3630 }
  0xde   : > { %v4076_v4 = vpop.permute.xlu1 %4075 }
  0xdf   : > { %v4118_v53 = vsel %vm4108_vm2, %v4098_v17, %v4076_v4  ;;  %v4694_v17 = vpack.i.b16 %v730_v31, %v884_v23  ;;  %v2911_v4 = vcombine.low %v2889_v26, %v2896_v28  ;;  %v4676_v23 = vpack.i.b16 %v5576_v0, %v824_v8  ;;  %v4577_v28 = vld.sshfl [vmem:[%s4993_s18 + $0x50] sm:$0x13 pattern:$0x75316420] }
  0xe0   : > { %4858 = vmatprep.mubr.msk.bf16.mxu1 %vm4144_vm3, %v4118_v53  ;;  %v371_v53 = vcombine.high %v5506_v44, %v5506_v44  ;;  %v463_v60 = vcombine.high %v4577_v28, %v4577_v28 }
  0xe1   : > { %v3126_v31 = vcombine.low %v4693_v45, %v4694_v17  ;;  %v2931_v10 = vcombine.low %v4675_v22, %v4676_v23  ;;  %v754_v45 = vcombine.high %v5550_v35, %v5550_v35  ;;  %v470_v17 = vrot.slane %v4577_v28, %v4988_v5 }
  0xe2   : > { %v385_v52 = vrot.slane %v371_v53, %v4988_v5  ;;  %v896_v53 = vunpack.i.h.s16 %v776_v21 }
  0xe3   : > { %v3148_v7 = vrot.slane %v3126_v31, %v4988_v5  ;;  %v826_v31 = vunpack.i.h.s16 %v5576_v0 }
  0xe4   : > { %v2928_v40 = vcombine.low %v385_v52, %v4672_v15  ;;  %v477_v52 = vrot.slane %v463_v60, %v4988_v5 }
  0xe5   : > { %v3157_v38 = vcombine.low %v3148_v7, %v3155_v18  ;;  %v4677_v14 = vpack.i.b16 %v455_v39, %v826_v31 }
  0xe6   : > { %v4068_v20 = vpop.permute.xlu0 %4067  ;;  %v2938_v35 = vrot.slane %v2928_v40, %v4988_v5 }
  0xe7   : > { %v4110_v24 = vsel %vm4108_vm2, %v4086_v11, %v4068_v20  ;;  %v2919_v11 = vrot.slane %v2911_v4, %v4988_v5  ;;  %v4673_v20 = vpack.i.b16 %v408_v49, %v814_v63  ;;  %v493_v49 = vrot.slane %v4578_v19, %v4988_v5 }
  0xe8   : > { %4850 = vmatprep.mubr.msk.bf16.mxu0 %vm4144_vm3, %v4110_v24  ;;  %v769_v24 = vrot.slane %v4590_v30, %v4988_v5  ;;  %v3171_v54 = vrot.slane %v3157_v38, %v4988_v5  ;;  %v478_v63 = vcombine.high %v470_v17, %v470_v17  ;;  %v2977_v22 = vcombine.low %v4677_v14, %v470_v17 }
  0xe9   : > { %v2927_v26 = vcombine.low %v2919_v11, %v2926_v1  ;;  %v2929_v61 = vcombine.low %v4673_v20, %v4674_v33  ;;  %v501_v2 = vcombine.high %v493_v49, %v493_v49  ;;  %v834_v3 = vunpack.i.h.s16 %v493_v49 }
  0xea   : > { %v777_v16 = vcombine.high %v769_v24, %v769_v24  ;;  %v894_v48 = vunpack.i.h.s16 %v769_v24  ;;  %v4696_v6 = vpack.i.b16 %v769_v24, %v754_v45  ;;  %v3172_v9 = vcombine.low %v3164_v13, %v3171_v54 }
  0xeb   : > { %v4089_v4 = vsel %vm4083_vm0, %v2927_v26, %v5432_v25  ;;  %v2945_v30 = vrot.slane %v2929_v61, %v4988_v5  ;;  %v2959_v25 = vrot.slane %v2931_v10, %v4988_v5  ;;  %v4678_v15 = vpack.i.b16 %v493_v49, %v478_v63 }
  0xec   : > { %v4697_v8 = vpack.i.b16 %v776_v21, %v894_v48  ;;  %v4679_v27 = vpack.i.b16 %v500_v50, %v834_v3  ;;  %v3173_v32 = vcombine.low %v753_v43, %v4696_v6  ;;  %v4104_v0 = vsel %vm4083_vm0, %v3172_v9, %v5483_v12 }
  0xed   : > { %v2960_v11 = vcombine.low %v2938_v35, %v2945_v30  ;;  %v2978_v23 = vcombine.low %v477_v52, %v4678_v15  ;;  %v2980_v24 = vcombine.low %v5393_v37, %v523_v46  ;;  %v2987_v12 = vrot.slane %v2977_v22, %v4988_v5 }
  0xee   : > { %v3181_v26 = vrot.slane %v3173_v32, %v4988_v5 }
  0xef   : > { %v4078_v44 = vpop.permute.xlu1 %4077  ;;  %v2968_v20 = vrot.slane %v2960_v11, %v4988_v5  ;;  %v2994_v21 = vrot.slane %v2978_v23, %v4988_v5  ;;  %v3008_v38 = vrot.slane %v2980_v24, %v4988_v5 }
  0xf0   : > { %v4120_v56 = vsel %vm4108_vm2, %v4101_v58, %v4078_v44  ;;  %v2952_v58 = vrot.slane %v2930_v42, %v4988_v5  ;;  %v836_v44 = vunpack.i.h.s16 %v500_v50 }
  0xf1   : > { %4859 = vmatmul.mubr.msk.bf16.vlgmr.msra.gmra.mrb[0].mxu1 %vm4144_vm3, %v4120_v56  ;;  %v4698_v56 = vpack.i.b16 %v777_v16, %v896_v53  ;;  %v3009_v10 = vcombine.low %v2987_v12, %v2994_v21 }
  0xf2   : > { %v2961_v1 = vcombine.low %v2952_v58, %v2959_v25  ;;  %v4680_v55 = vpack.i.b16 %v501_v2, %v836_v44 }
  0xf3   : > { %v3174_v7 = vcombine.low %v4697_v8, %v4698_v56  ;;  %v3017_v16 = vrot.slane %v3009_v10, %v4988_v5 }
  0xf4   : > { %v2975_v33 = vrot.slane %v2961_v1, %v4988_v5  ;;  %v2979_v62 = vcombine.low %v4679_v27, %v4680_v55 }
  0xf5   : > { %v3188_v28 = vrot.slane %v3174_v7, %v4988_v5 }
  0xf6   : > { %v2976_v34 = vcombine.low %v2968_v20, %v2975_v33  ;;  %v3001_v36 = vrot.slane %v2979_v62, %v4988_v5 }
  0xf7   : > { %v3189_v40 = vcombine.low %v3181_v26, %v3188_v28 }
  0xf8   : > { %v4092_v61 = vsel %vm4083_vm0, %v2976_v34, %v5494_v29  ;;  %v3010_v37 = vcombine.low %v3001_v36, %v3008_v38 }
  0xf9   : > { %v3196_v45 = vrot.slane %v3189_v40, %v4988_v5 }
  0xfa   : > { %v4070_v51 = vpop.permute.xlu0 %4069  ;;  %v3024_v17 = vrot.slane %v3010_v37, %v4988_v5 }
  0xfb   : > { %v4112_v57 = vsel %vm4108_vm2, %v4089_v4, %v4070_v51  ;;  %v4107_v48 = vsel %vm4083_vm0, %v3196_v45, %v5418_v47  ;;  %v5652_v47 = vld [vmem:[%s5786_s2] ss:$0 sm:$0xff] }
  0xfc   : > { %4851 = vmatmul.mubr.msk.bf16.vlgmr.msra.gmra.mrb[0].mxu0 %vm4144_vm3, %v4112_v57  ;;  %v3025_v29 = vcombine.low %v3017_v16, %v3024_v17 }
  0xfe   : > { %v4095_v50 = vsel %vm4083_vm0, %v3025_v29, %v5515_v59 }
 0x103   : > { %v4080_v18 = vpop.permute.xlu1 %4079 }
 0x104   : > { %v4122_v19 = vsel %vm4108_vm2, %v4104_v0, %v4080_v18 }
 0x105   : > { %4862 = vmatprep.mubr.msk.bf16.mxu1 %vm4144_vm3, %v4122_v19 }
 0x10d   : > { %v4072_v42 = vpop.permute.xlu0 %4071 }
 0x10e   : > { %v4114_v43 = vsel %vm4108_vm2, %v4092_v61, %v4072_v42 }
 0x10f   : > { %4854 = vmatprep.mubr.msk.bf16.mxu0 %vm4144_vm3, %v4114_v43 }
 0x113   : > { %v4082_v4 = vpop.permute.xlu1 %4081 }
 0x114   : > { %v4124_v49 = vsel %vm4108_vm2, %v4107_v48, %v4082_v4 }
 0x115   : > { %4863 = vmatmul.mubr.msk.bf16.gmra.mrb[4].mxu1 %vm4144_vm3, %v4124_v49 }
 0x11a   : > { %v4074_v51 = vpop.permute.xlu0 %4073 }
 0x11b   : > { %v4116_v53 = vsel %vm4108_vm2, %v4095_v50, %v4074_v51 }
 0x11c   : > { %4855 = vmatmul.mubr.msk.bf16.gmra.mrb[4].mxu0 %vm4144_vm3, %v4116_v53 }
 0x1c4   : > { %v4860_v13 = vpop.f32.mrb[0].mxu1 }
 0x1c5   : > { %v4231_v54 = vpop.f32.mrb[1].mxu1  ;;  %v5655_v35 = vadd.f32 %v4860_v13, %v5652_v47 }
 0x1c6   : > { %v4861_v5 = vpop.f32.mrb[2].mxu1  ;;  %v5672_v3 = vadd.f32 %v5652_v47, %v4231_v54 }
 0x1c7   : > { %v4234_v57 = vpop.f32.mrb[3].mxu1  ;;  %v4798_v30 = vmul.f32 -1.442695, %v5655_v35  ;;  %v5662_v39 = vadd.f32 %v4861_v5, %v5652_v47 }
 0x1c8   : > { %v4796_v9 = vmul.f32 -1.442695, %v5672_v3  ;;  %v5682_v11 = vadd.f32 %v5652_v47, %v4234_v57 }
 0x1c9   : > { %4886 = vpow2.f32 %v4798_v30  ;;  %v4799_v6 = vmul.f32 -1.442695, %v5662_v39 }
 0x1ca   : > { %v4797_v14 = vmul.f32 -1.442695, %v5682_v11 }
 0x1cf   : > { %v4852_v59 = vpop.f32.mrb[0].mxu0 }
 0x1d0   : > { %v5659_v58 = vadd.f32 %v4852_v59, %v5652_v47  ;;  %v4199_v25 = vpop.f32.mrb[1].mxu0 }
 0x1d1   : > { %v5665_v60 = vadd.f32 %v5652_v47, %v4199_v25  ;;  %v4853_v63 = vpop.f32.mrb[2].mxu0 }
 0x1d2   : > { %v4790_v41 = vmul.f32 -1.442695, %v5659_v58  ;;  %v5669_v2 = vadd.f32 %v4853_v63, %v5652_v47  ;;  %v4202_v31 = vpop.f32.mrb[3].mxu0 }
 0x1d3   : > { %v4788_v44 = vmul.f32 -1.442695, %v5665_v60  ;;  %v5678_v56 = vadd.f32 %v5652_v47, %v4202_v31  ;;  %v4887_v52 = vpop.eup %4886 }
 0x1d4   : > { %4888 = vpow2.f32 %v4790_v41  ;;  %v4791_v8 = vmul.f32 -1.442695, %v5669_v2  ;;  %v4316_v27 = vadd.f32 1.0, %v4887_v52 }
 0x1d5   : > { %4890 = vpow2.f32 %v4788_v44  ;;  %v4789_v1 = vmul.f32 -1.442695, %v5678_v56 }
 0x1d6   : > { %4892 = vpow2.f32 %v4799_v6 }
 0x1d7   : > { %4894 = vpow2.f32 %v4791_v8 }
 0x1d8   : > { %4896 = vpow2.f32 %v4796_v9 }
 0x1d9   : > { %4898 = vpow2.f32 %v4789_v1 }
 0x1de   : > { %v4889_v46 = vpop.eup %4888 }
 0x1df   : > { %v4308_v15 = vadd.f32 1.0, %v4889_v46  ;;  %v4891_v55 = vpop.eup %4890 }
 0x1e0   : > { %v4893_v32 = vpop.eup %4892  ;;  %v4306_v0 = vadd.f32 1.0, %v4891_v55 }
 0x1e1   : > { %4900 = vrcp.f32 %v4308_v15  ;;  %v4895_v7 = vpop.eup %4894  ;;  %v4317_v20 = vadd.f32 1.0, %v4893_v32 }
 0x1e2   : > { %4902 = vpow2.f32 %v4797_v14  ;;  %v4309_v18 = vadd.f32 1.0, %v4895_v7  ;;  %v4897_v19 = vpop.eup %4896 }
 0x1e3   : > { %4904 = vrcp.f32 %v4316_v27  ;;  %v4899_v33 = vpop.eup %4898  ;;  %v4314_v23 = vadd.f32 1.0, %v4897_v19 }
 0x1e4   : > { %4906 = vrcp.f32 %v4309_v18  ;;  %v4307_v28 = vadd.f32 1.0, %v4899_v33 }
 0x1e5   : > { %4908 = vrcp.f32 %v4306_v0 }
 0x1e6   : > { %4910 = vrcp.f32 %v4317_v20 }
 0x1e7   : > { %4912 = vrcp.f32 %v4314_v23 }
 0x1e8   : > { %v4864_v22 = vpop.f32.mrb[4].mxu1  ;;  %4914 = vrcp.f32 %v4307_v28 }
 0x1e9   : > { %v4247_v62 = vpop.f32.mrb[5].mxu1  ;;  %v5710_v50 = vadd.f32 %v4864_v22, %v5652_v47 }
 0x1ea   : > { %v4865_v24 = vpop.f32.mrb[6].mxu1  ;;  %v5688_v40 = vadd.f32 %v5652_v47, %v4247_v62 }
 0x1eb   : > { %v4901_v26 = vpop.eup %4900  ;;  %v4250_v34 = vpop.f32.mrb[7].mxu1 }
 0x1ec   : > { %v4903_v12 = vpop.eup %4902  ;;  %4370 = vrot.lane.b32.xlu0 %v4901_v26, %s4957_s27  ;;  %v5699_v16 = vadd.f32 %v5652_v47, %v4250_v34  ;;  %v4800_v51 = vmul.f32 -1.442695, %v5688_v40 }
 0x1ed   : > { %v4905_v21 = vpop.eup %4904  ;;  %v4315_v36 = vadd.f32 1.0, %v4903_v12 }
 0x1ee   : > { %v4907_v10 = vpop.eup %4906  ;;  %v4801_v5 = vmul.f32 -1.442695, %v5699_v16 }
 0x1ef   : > { %v4856_v38 = vpop.f32.mrb[4].mxu0  ;;  %4372 = vrot.lane.b32.xlu1 %v4907_v10, %s4957_s27  ;;  %v4909_v4 = vpop.eup %4908  ;;  %4916 = vrcp.f32 %v4315_v36 }
 0x1f0   : > { %v5691_v61 = vadd.f32 %v4856_v38, %v5652_v47  ;;  %v4215_v42 = vpop.f32.mrb[5].mxu0  ;;  %4386 = vrot.lane.b32.xlu0 %v4905_v21, %s4957_s27  ;;  %v4911_v13 = vpop.eup %4910 }
 0x1f1   : > { %v5695_v37 = vadd.f32 %v5652_v47, %v4215_v42  ;;  %v4857_v43 = vpop.f32.mrb[6].mxu0  ;;  %v4913_v57 = vpop.eup %4912 }
 0x1f2   : > { %v4794_v45 = vmul.f32 -1.442695, %v5691_v61  ;;  %v5702_v17 = vadd.f32 %v4857_v43, %v5652_v47  ;;  %v4218_v48 = vpop.f32.mrb[7].mxu0  ;;  %v4915_v30 = vpop.eup %4914 }
 0x1f3   : > { %v4792_v49 = vmul.f32 -1.442695, %v5695_v37  ;;  %v5707_v29 = vadd.f32 %v5652_v47, %v4218_v48  ;;  %4388 = vrot.lane.b32.xlu1 %v4911_v13, %s4957_s27  ;;  %v4802_v47 = vmul.f32 -1.442695, %v5710_v50 }
 0x1f4   : > { %4918 = vpow2.f32 %v4794_v45  ;;  %v4795_v53 = vmul.f32 -1.442695, %v5702_v17  ;;  %4366 = vrot.lane.b32.xlu0 %v4909_v4, %s4957_s27 }
 0x1f5   : > { %4920 = vpow2.f32 %v4792_v49  ;;  %v4793_v54 = vmul.f32 -1.442695, %v5707_v29 }
 0x1f6   : > { %4922 = vpow2.f32 %v4795_v53 }
 0x1f7   : > { %4924 = vpow2.f32 %v4793_v54  ;;  %4368 = vrot.lane.b32.xlu1 %v4915_v30, %s4957_s27 }
 0x1f8   : > { %4926 = vpow2.f32 %v4800_v51  ;;  %4382 = vrot.lane.b32.xlu0 %v4913_v57, %s4957_s27 }
 0x1f9   : > { %4928 = vpow2.f32 %v4801_v5  ;;  %v4917_v59 = vpop.eup %4916 }
 0x1fa   : > { %4930 = vpow2.f32 %v4802_v47 }
 0x1fb   : > { %4384 = vrot.lane.b32.xlu1 %v4917_v59, %s4957_s27 }
 0x1fe   : > { %v4919_v25 = vpop.eup %4918 }
 0x1ff   : > { %v4921_v63 = vpop.eup %4920  ;;  %v4312_v41 = vadd.f32 1.0, %v4919_v25 }
 0x200   : > { %v4923_v31 = vpop.eup %4922  ;;  %v4310_v6 = vadd.f32 1.0, %v4921_v63 }
 0x201   : > { %v4925_v44 = vpop.eup %4924  ;;  %4932 = vrcp.f32 %v4312_v41  ;;  %v4313_v8 = vadd.f32 1.0, %v4923_v31 }
 0x202   : > { %v4927_v9 = vpop.eup %4926  ;;  %v4311_v1 = vadd.f32 1.0, %v4925_v44 }
 0x203   : > { %4934 = vrcp.f32 %v4313_v8  ;;  %v4929_v52 = vpop.eup %4928  ;;  %v4318_v46 = vadd.f32 1.0, %v4927_v9 }
 0x204   : > { %4936 = vrcp.f32 %v4310_v6  ;;  %v4931_v14 = vpop.eup %4930  ;;  %v4319_v15 = vadd.f32 1.0, %v4929_v52 }
 0x205   : > { %4938 = vrcp.f32 %v4311_v1  ;;  %v4320_v27 = vadd.f32 1.0, %v4931_v14 }
 0x206   : > { %4940 = vrcp.f32 %v4318_v46 }
 0x207   : > { %4942 = vrcp.f32 %v4319_v15 }
 0x208   : > { %4944 = vrcp.f32 %v4320_v27 }
 0x20b   : > { %v4933_v55 = vpop.eup %4932 }
 0x20c   : > { %4378 = vrot.lane.b32.xlu0 %v4933_v55, %s4957_s27 }
 0x20d   : > { %v4935_v32 = vpop.eup %4934 }
 0x20e   : > { %4380 = vrot.lane.b32.xlu1 %v4935_v32, %s4957_s27  ;;  %v4937_v7 = vpop.eup %4936 }
 0x20f   : > { %v4939_v0 = vpop.eup %4938 }
 0x210   : > { %4374 = vrot.lane.b32.xlu0 %v4937_v7, %s4957_s27  ;;  %v4941_v18 = vpop.eup %4940 }
 0x211   : > { %v4943_v19 = vpop.eup %4942 }
 0x212   : > { %4376 = vrot.lane.b32.xlu1 %v4939_v0, %s4957_s27  ;;  %v4945_v20 = vpop.eup %4944 }
 0x214   : > { %4390 = vrot.lane.b32.xlu0 %v4941_v18, %s4957_s27 }
 0x216   : > { %4392 = vrot.lane.b32.xlu1 %v4943_v19, %s4957_s27 }
 0x218   : > { %4394 = vrot.lane.b32.xlu0 %v4945_v20, %s4957_s27 }
 0x25e   : > { %v4371_v33 = vpop.permute.xlu0 %4370 }
 0x25f   : > { %v4413_v22 = vmul.f32 %v4371_v33, %v5659_v58 }
 0x261   : > { %v4823_v23 = vpack.c.bf16 %v4413_v22, %v4413_v22  ;;  %v4373_v26 = vpop.permute.xlu1 %4372 }
 0x262   : > { %v4387_v62 = vpop.permute.xlu0 %4386  ;;  %v4414_v58 = vmul.f32 %v4373_v26, %v5669_v2 }
 0x263   : > { %4490 = vst.msk [vmem:[%s5735_s5 + $0x8] sm:$0xf] %vm4487_vm4, %v4823_v23  ;;  %v4421_v24 = vmul.f32 %v4387_v62, %v5655_v35 }
 0x264   : > { %v4824_v12 = vpack.c.bf16 %v4414_v58, %v4414_v58 }
 0x265   : > { %v4831_v28 = vpack.c.bf16 %v4421_v24, %v4421_v24  ;;  %v4389_v36 = vpop.permute.xlu1 %4388 }
 0x266   : > { %v4367_v34 = vpop.permute.xlu0 %4366  ;;  %4491 = vst.msk [vmem:[%s5735_s5 + $0xc] sm:$0xf] %vm4487_vm4, %v4824_v12  ;;  %v4422_v38 = vmul.f32 %v4389_v36, %v5662_v39 }
 0x267   : > { %4498 = vst.msk [vmem:[%s5735_s5 + $0x28] sm:$0xf] %vm4487_vm4, %v4831_v28  ;;  %v4411_v21 = vmul.f32 %v4367_v34, %v5665_v60 }
 0x268   : > { %v4832_v10 = vpack.c.bf16 %v4422_v38, %v4422_v38 }
 0x269   : > { %v4821_v35 = vpack.c.bf16 %v4411_v21, %v4411_v21  ;;  %v4369_v43 = vpop.permute.xlu1 %4368 }
 0x26a   : > { %v4383_v42 = vpop.permute.xlu0 %4382  ;;  %4499 = vst.msk [vmem:[%s5735_s5 + $0x2c] sm:$0xf] %vm4487_vm4, %v4832_v10  ;;  %v4412_v60 = vmul.f32 %v4369_v43, %v5678_v56 }
 0x26b   : > { %4488 = vst.msk [vmem:[%s5735_s5] sm:$0xf] %vm4487_vm4, %v4821_v35  ;;  %v4419_v2 = vmul.f32 %v4383_v42, %v5672_v3 }
 0x26c   : > { %v4822_v48 = vpack.c.bf16 %v4412_v60, %v4412_v60 }
 0x26d   : > { %v4829_v45 = vpack.c.bf16 %v4419_v2, %v4419_v2  ;;  %v4385_v39 = vpop.permute.xlu1 %4384 }
 0x26e   : > { %4489 = vst.msk [vmem:[%s5735_s5 + $0x4] sm:$0xf] %vm4487_vm4, %v4822_v48  ;;  %v4420_v4 = vmul.f32 %v4385_v39, %v5682_v11 }
 0x26f   : > { %4496 = vst.msk [vmem:[%s5735_s5 + $0x20] sm:$0xf] %vm4487_vm4, %v4829_v45 }
 0x270   : > { %v4830_v49 = vpack.c.bf16 %v4420_v4, %v4420_v4 }
 0x272   : > { %4497 = vst.msk [vmem:[%s5735_s5 + $0x24] sm:$0xf] %vm4487_vm4, %v4830_v49 }
 0x27e   : > { %v4379_v3 = vpop.permute.xlu0 %4378 }
 0x27f   : > { %v4417_v51 = vmul.f32 %v4379_v3, %v5691_v61 }
 0x280   : > { %v4381_v53 = vpop.permute.xlu1 %4380 }
 0x281   : > { %v4827_v56 = vpack.c.bf16 %v4417_v51, %v4417_v51  ;;  %v4418_v13 = vmul.f32 %v4381_v53, %v5702_v17 }
 0x282   : > { %v4375_v54 = vpop.permute.xlu0 %4374 }
 0x283   : > { %4494 = vst.msk [vmem:[%s5735_s5 + $0x18] sm:$0xf] %vm4487_vm4, %v4827_v56  ;;  %v4828_v5 = vpack.c.bf16 %v4418_v13, %v4418_v13  ;;  %v4415_v57 = vmul.f32 %v4375_v54, %v5695_v37 }
 0x284   : > { %v4377_v11 = vpop.permute.xlu1 %4376 }
 0x285   : > { %4495 = vst.msk [vmem:[%s5735_s5 + $0x1c] sm:$0xf] %vm4487_vm4, %v4828_v5  ;;  %v4825_v47 = vpack.c.bf16 %v4415_v57, %v4415_v57  ;;  %v4416_v61 = vmul.f32 %v4377_v11, %v5707_v29 }
 0x286   : > { %v4391_v30 = vpop.permute.xlu0 %4390 }
 0x287   : > { %4492 = vst.msk [vmem:[%s5735_s5 + $0x10] sm:$0xf] %vm4487_vm4, %v4825_v47  ;;  %v4826_v59 = vpack.c.bf16 %v4416_v61, %v4416_v61  ;;  %v4423_v17 = vmul.f32 %v4391_v30, %v5688_v40 }
 0x288   : > { %v4393_v25 = vpop.permute.xlu1 %4392 }
 0x289   : > { %4493 = vst.msk [vmem:[%s5735_s5 + $0x14] sm:$0xf] %vm4487_vm4, %v4826_v59  ;;  %v4833_v63 = vpack.c.bf16 %v4423_v17, %v4423_v17  ;;  %v4424_v37 = vmul.f32 %v4393_v25, %v5699_v16 }
 0x28a   : > { %v4395_v41 = vpop.permute.xlu0 %4394 }
 0x28b   : > { %4500 = vst.msk [vmem:[%s5735_s5 + $0x30] sm:$0xf] %vm4487_vm4, %v4833_v63  ;;  %v4834_v31 = vpack.c.bf16 %v4424_v37, %v4424_v37  ;;  %v4425_v44 = vmul.f32 %v4395_v41, %v5710_v50 }
 0x28d   : > { %4501 = vst.msk [vmem:[%s5735_s5 + $0x34] sm:$0xf] %vm4487_vm4, %v4834_v31  ;;  %v4835_v29 = vpack.c.bf16 %v4425_v44, %v4425_v44 }
 0x28f   : > { %4502 = vst.msk [vmem:[%s5735_s5 + $0x38] sm:$0xf] %vm4487_vm4, %v4835_v29 }
 0x290 PF: > { %s13_s12 = sadd.s32 1, %s4952_s12  }
 0x291   : > { %p10_p5 = scmp.ge.s32.totalorder %s13_s12, 4  }
 0x293   :  { %12 = sbr.rel (!%p10_p5) target bundleno = 1 (0x1), region = 62 }

</bundles_post_ra>
